<compile_context>
chip_gen: v6e
topology: v6e:2x2x1
jax: 0.10.0
libtpu: 0.0.40
codegen_flags: <defaults>
</compile_context>

<pallas_src>
import functools

import jax
import jax.numpy as jnp
import numpy as np
from jax.experimental import pallas as pl


# ----------------------------------------------------------------------------
# Fused kernel: all LSTM layers (wavefront) + fused heads
# ----------------------------------------------------------------------------
def sep_lstm_kernel(*refs, num_layers, seq_len, batch, hidden):
    """refs layout (inputs..., then the single output):
      inputs : x_tm (T*B, F) time-major flattened input,
               w_ih0 (F, 4H), w_hh0 (H, 4H), b0 (1, 4H),
               [w_stack_l (2H, 4H), b_l (1, 4H)]  for l = 1 .. L-1,
               w_heads (H, A+TO), b_heads (1, A+TO)
      outputs: out (B, A+TO)
    """
    T, B, H = seq_len, batch, hidden

    x_ref = refs[0]
    w_ih0_ref, w_hh0_ref, b0_ref = refs[1:4]
    upper_refs = [(refs[4 + 2 * i], refs[5 + 2 * i])
                  for i in range(num_layers - 1)]
    idx = 4 + 2 * (num_layers - 1)
    w_heads_ref, b_heads_ref = refs[idx], refs[idx + 1]
    out_ref = refs[idx + 2]

    # Layer-0 input projection hoisted across all timesteps: one
    # (T*B, F) x (F, 4H) matmul, off the recurrent critical path.
    # Time-major layout => rows t*B:(t+1)*B are timestep t (a whole
    # sublane tile), so per-step slices are plain static vreg selects.
    gx0 = (jnp.dot(x_ref[...], w_ih0_ref[...],
                   preferred_element_type=jnp.float32)
           + b0_ref[...])                                   # (T*B, 4H)

    w_hh0 = w_hh0_ref[...]                                  # (H, 4H)
    upper_w = [(w_ref[...], b_ref[...]) for w_ref, b_ref in upper_refs]

    zeros = jnp.zeros((B, H), jnp.float32)
    h = [zeros] * num_layers
    c = [zeros] * num_layers

    def lstm_cell(gates, c_prev):
        # PyTorch gate order [i, f, g, o]. One sigmoid over the full 4H
        # vreg (3 of 4 slices used); tanh only on the g slice to trim the
        # per-step EUP chain.
        sig = jax.nn.sigmoid(gates)
        i_g = sig[:, 0 * H:1 * H]
        f_g = sig[:, 1 * H:2 * H]
        o_g = sig[:, 3 * H:4 * H]
        g_g = jnp.tanh(gates[:, 2 * H:3 * H])
        c_new = f_g * c_prev + i_g * g_g
        h_new = o_g * jnp.tanh(c_new)
        return h_new, c_new

    # Wavefront recurrence, fully unrolled (static T, L).
    # v5e note: h @ W_hh is a tiny (B,H)x(H,4H) MXU op; a VPU-only path
    # could be benchmarked there, but the MXU path is kept for all chips.
    for t in range(T):
        # Layer 0: hoisted gx + recurrent projection (add kept adjacent to
        # the dot so Mosaic can fold it into the MXU accumulate on v7x).
        gates0 = gx0[t * B:(t + 1) * B, :] + jnp.dot(
            h[0], w_hh0, preferred_element_type=jnp.float32)
        h[0], c[0] = lstm_cell(gates0, c[0])

        # Upper layers: fused [h_lower, h_self] @ [W_ih; W_hh] + b.
        for l in range(1, num_layers):
            w_stack, b_l = upper_w[l - 1]
            hcat = jnp.concatenate([h[l - 1], h[l]], axis=1)     # (B, 2H)
            gates = jnp.dot(hcat, w_stack,
                            preferred_element_type=jnp.float32) + b_l
            h[l], c[l] = lstm_cell(gates, c[l])

    # Fused heads: single (B, H) x (H, A+TO) matmul on the last hidden
    # state; the wrapper splits act / time outside the kernel.
    out_ref[...] = (jnp.dot(h[num_layers - 1], w_heads_ref[...],
                            preferred_element_type=jnp.float32)
                    + b_heads_ref[...])


# ----------------------------------------------------------------------------
# Wrapper
# ----------------------------------------------------------------------------
_SUBLANE = 8


@jax.jit
def sep_lstm_forward(log_prefix, trace_prefix, params):
    """Mirrors SEP_LSTM.forward: only trace_prefix is consumed."""
    del log_prefix  # unused in the PyTorch forward as well
    B, T, F = trace_prefix.shape
    H = params["lstm"][0]["w_hh"].shape[0]
    A = params["w_act"].shape[1]
    TO = params["w_time"].shape[1]
    L = len(params["lstm"])

    # Pad batch to a full sublane tile so every per-step slice / vector op
    # uses all 8 sublanes and no masked narrow accesses are generated.
    Bp = max(_SUBLANE, -(-B // _SUBLANE) * _SUBLANE)
    x = trace_prefix.astype(jnp.float32)
    if Bp != B:
        x = jnp.pad(x, ((0, Bp - B), (0, 0), (0, 0)))
    # Time-major, pre-flattened (wrapper-side XLA op, not an in-kernel
    # relayout): rows t*Bp:(t+1)*Bp hold timestep t.
    x_tm = jnp.transpose(x, (1, 0, 2)).reshape(T * Bp, F)

    # Pre-stacked weights: upper layers get [W_ih; W_hh] fused, heads fused.
    ops = [x_tm,
           params["lstm"][0]["w_ih"], params["lstm"][0]["w_hh"],
           params["lstm"][0]["b"]]
    for l in range(1, L):
        lp = params["lstm"][l]
        ops.append(jnp.concatenate([lp["w_ih"], lp["w_hh"]], axis=0))  # (2H,4H)
        ops.append(lp["b"])
    ops.append(jnp.concatenate([params["w_act"], params["w_time"]], axis=1))
    ops.append(jnp.concatenate([params["b_act"], params["b_time"]], axis=1))

    kernel = functools.partial(sep_lstm_kernel, num_layers=L, seq_len=T,
                               batch=Bp, hidden=H)
    # Single grid-less pallas_call: whole problem (<100 KiB) lives in VMEM,
    # no scratch, no HBM round trips of intermediates.
    # TODO(synk): if this forward is invoked per decode step / per trace,
    # add a leading 'parallel' grid over independent sequences (constant
    # index_maps for weights) to amortize launch + weight-DMA cost.
    out = pl.pallas_call(
        kernel,
        out_shape=jax.ShapeDtypeStruct((Bp, A + TO), jnp.float32),
    )(*ops)
    return out[:B, :A], out[:B, A:A + TO]


# ----------------------------------------------------------------------------
# Deterministic parameter construction (PyTorch-style U(-1/sqrt(H), 1/sqrt(H)))
# Weight layout is (in, 4H)/(H, 4H): transposed vs. PyTorch's (4H, in)/(4H, H),
# with b = b_ih + b_hh pre-folded.  Real checkpoints must be converted.
# ----------------------------------------------------------------------------
def init_params(key, input_size, hidden_size, num_layers,
                act_output_size, time_output_size):
    H = hidden_size
    k = 1.0 / np.sqrt(H)
    params = {"lstm": []}
    for layer in range(num_layers):
        in_dim = input_size if layer == 0 else H
        key, k1, k2, k3, k4 = jax.random.split(key, 5)
        w_ih = jax.random.uniform(k1, (in_dim, 4 * H), jnp.float32, -k, k)
        w_hh = jax.random.uniform(k2, (H, 4 * H), jnp.float32, -k, k)
        b_ih = jax.random.uniform(k3, (4 * H,), jnp.float32, -k, k)
        b_hh = jax.random.uniform(k4, (4 * H,), jnp.float32, -k, k)
        params["lstm"].append({
            "w_ih": w_ih, "w_hh": w_hh, "b": (b_ih + b_hh)[None, :],
        })
    key, k5, k6, k7, k8 = jax.random.split(key, 5)
    params["w_act"] = jax.random.uniform(
        k5, (H, act_output_size), jnp.float32, -k, k)
    params["b_act"] = jax.random.uniform(
        k6, (act_output_size,), jnp.float32, -k, k)[None, :]
    params["w_time"] = jax.random.uniform(
        k7, (H, time_output_size), jnp.float32, -k, k)
    params["b_time"] = jax.random.uniform(
        k8, (time_output_size,), jnp.float32, -k, k)[None, :]
    return params


# ----------------------------------------------------------------------------
# Pure-JAX reference (for correctness check)
# ----------------------------------------------------------------------------
def sep_lstm_ref(trace_prefix, params):
    x = trace_prefix                                        # (B, T, F)
    for layer in params["lstm"]:
        H = layer["w_hh"].shape[0]
        B = x.shape[0]

        def step(carry, x_t, layer=layer, H=H):
            h, c = carry
            gates = x_t @ layer["w_ih"] + h @ layer["w_hh"] + layer["b"][0]
            i = jax.nn.sigmoid(gates[:, 0 * H:1 * H])
            f = jax.nn.sigmoid(gates[:, 1 * H:2 * H])
            g = jnp.tanh(gates[:, 2 * H:3 * H])
            o = jax.nn.sigmoid(gates[:, 3 * H:4 * H])
            c_new = f * c + i * g
            h_new = o * jnp.tanh(c_new)
            return (h_new, c_new), h_new

        init = (jnp.zeros((B, H), jnp.float32), jnp.zeros((B, H), jnp.float32))
        _, h_seq = jax.lax.scan(step, init, jnp.swapaxes(x, 0, 1))
        x = jnp.swapaxes(h_seq, 0, 1)                       # (B, T, H)
    h_last = x[:, -1, :]
    act = h_last @ params["w_act"] + params["b_act"]
    time = h_last @ params["w_time"] + params["b_time"]
    return act, time


# ----------------------------------------------------------------------------
if __name__ == "__main__":
    # Module hyperparameters (small, consistent with the forward signature).
    input_size = 4        # num_features
    hidden_size = 32
    num_layers = 2
    dropout = 0.0
    bidirect = False
    act_output_size = 8   # num_act
    time_output_size = 1

    batch_size = 2
    seq_len = 8           # trace_prefix_len

    key = jax.random.PRNGKey(0)
    key, kp, kx1, kx2 = jax.random.split(key, 4)
    params = init_params(kp, input_size, hidden_size, num_layers,
                         act_output_size, time_output_size)

    log_prefix = jax.random.normal(
        kx1, (batch_size, seq_len, input_size), jnp.float32)
    trace_prefix = jax.random.normal(
        kx2, (batch_size, seq_len, input_size), jnp.float32)

    act_pred, time_pred = sep_lstm_forward(log_prefix, trace_prefix, params)
    act_pred = jax.block_until_ready(act_pred)
    time_pred = jax.block_until_ready(time_pred)

    assert act_pred.shape == (batch_size, act_output_size)
    assert time_pred.shape == (batch_size, time_output_size)

    act_ref, time_ref = sep_lstm_ref(trace_prefix, params)
    np.testing.assert_allclose(np.asarray(act_pred), np.asarray(act_ref),
                               rtol=1e-5, atol=1e-5)
    np.testing.assert_allclose(np.asarray(time_pred), np.asarray(time_ref),
                               rtol=1e-5, atol=1e-5)

    print("KERNEL_OK")
</pallas_src>

<mosaic_0001>
module attributes {stable_mosaic.version = 11 : i64} {
  func.func @sep_lstm_kernel(%arg0: memref<64x4xf32, #tpu.memory_space<vmem>>, %arg1: memref<4x128xf32, #tpu.memory_space<vmem>>, %arg2: memref<32x128xf32, #tpu.memory_space<vmem>>, %arg3: memref<1x128xf32, #tpu.memory_space<vmem>>, %arg4: memref<64x128xf32, #tpu.memory_space<vmem>>, %arg5: memref<1x128xf32, #tpu.memory_space<vmem>>, %arg6: memref<32x9xf32, #tpu.memory_space<vmem>>, %arg7: memref<1x9xf32, #tpu.memory_space<vmem>>, %arg8: memref<8x9xf32, #tpu.memory_space<vmem>>) attributes {dimension_semantics = [], scalar_prefetch = 0 : i64, scratch_operands = 0 : i64, tpu.core_type = #tpu.core_type<tc>} {
    %c0 = arith.constant 0 : index
    %c0_0 = arith.constant 0 : index
    %0 = vector.load %arg0[%c0, %c0_0] : memref<64x4xf32, #tpu.memory_space<vmem>>, vector<64x4xf32>
    %c0_1 = arith.constant 0 : index
    %c0_2 = arith.constant 0 : index
    %1 = vector.load %arg1[%c0_1, %c0_2] : memref<4x128xf32, #tpu.memory_space<vmem>>, vector<4x128xf32>
    %cst = arith.constant dense<0.000000e+00> : vector<64x128xf32>
    %2 = tpu.matmul %0, %1, %cst {dimension_numbers = #tpu.dot_dimension_numbers<[1], [0], [0], [1], [0, 0, 1, 1], [], []>} : vector<64x4xf32>, vector<4x128xf32>, vector<64x128xf32> -> vector<64x128xf32>
    %c0_3 = arith.constant 0 : index
    %c0_4 = arith.constant 0 : index
    %3 = vector.load %arg3[%c0_3, %c0_4] : memref<1x128xf32, #tpu.memory_space<vmem>>, vector<1x128xf32>
    %4 = vector.broadcast %3 : vector<1x128xf32> to vector<64x128xf32>
    %5 = arith.addf %2, %4 : vector<64x128xf32>
    %c0_5 = arith.constant 0 : index
    %c0_6 = arith.constant 0 : index
    %6 = vector.load %arg2[%c0_5, %c0_6] : memref<32x128xf32, #tpu.memory_space<vmem>>, vector<32x128xf32>
    %c0_7 = arith.constant 0 : index
    %c0_8 = arith.constant 0 : index
    %7 = vector.load %arg4[%c0_7, %c0_8] : memref<64x128xf32, #tpu.memory_space<vmem>>, vector<64x128xf32>
    %c0_9 = arith.constant 0 : index
    %c0_10 = arith.constant 0 : index
    %8 = vector.load %arg5[%c0_9, %c0_10] : memref<1x128xf32, #tpu.memory_space<vmem>>, vector<1x128xf32>
    %cst_11 = arith.constant 0.000000e+00 : f32
    %9 = vector.broadcast %cst_11 : f32 to vector<8x32xf32>
    %10 = vector.extract_strided_slice %5 {offsets = [0, 0], sizes = [8, 128], strides = [1, 1]} : vector<64x128xf32> to vector<8x128xf32>
    %cst_12 = arith.constant dense<0.000000e+00> : vector<8x128xf32>
    %11 = tpu.matmul %9, %6, %cst_12 {dimension_numbers = #tpu.dot_dimension_numbers<[1], [0], [0], [1], [0, 0, 1, 1], [], []>} : vector<8x32xf32>, vector<32x128xf32>, vector<8x128xf32> -> vector<8x128xf32>
    %12 = arith.addf %10, %11 : vector<8x128xf32>
    %13 = arith.negf %12 : vector<8x128xf32>
    %14 = math.exp %13 : vector<8x128xf32>
    %cst_13 = arith.constant 1.000000e+00 : f32
    %15 = vector.broadcast %cst_13 : f32 to vector<8x128xf32>
    %16 = arith.addf %15, %14 : vector<8x128xf32>
    %17 = arith.divf %15, %16 : vector<8x128xf32>
    %18 = vector.extract_strided_slice %17 {offsets = [0, 0], sizes = [8, 32], strides = [1, 1]} : vector<8x128xf32> to vector<8x32xf32>
    %19 = vector.extract_strided_slice %17 {offsets = [0, 32], sizes = [8, 32], strides = [1, 1]} : vector<8x128xf32> to vector<8x32xf32>
    %20 = vector.extract_strided_slice %17 {offsets = [0, 96], sizes = [8, 32], strides = [1, 1]} : vector<8x128xf32> to vector<8x32xf32>
    %21 = vector.extract_strided_slice %12 {offsets = [0, 64], sizes = [8, 32], strides = [1, 1]} : vector<8x128xf32> to vector<8x32xf32>
    %22 = math.tanh %21 : vector<8x32xf32>
    %23 = arith.mulf %19, %9 : vector<8x32xf32>
    %24 = arith.mulf %18, %22 : vector<8x32xf32>
    %25 = arith.addf %23, %24 : vector<8x32xf32>
    %26 = math.tanh %25 : vector<8x32xf32>
    %27 = arith.mulf %20, %26 : vector<8x32xf32>
    %28 = tpu.concatenate %27, %9 in 1 : vector<8x32xf32>, vector<8x32xf32> -> vector<8x64xf32>
    %cst_14 = arith.constant dense<0.000000e+00> : vector<8x128xf32>
    %29 = tpu.matmul %28, %7, %cst_14 {dimension_numbers = #tpu.dot_dimension_numbers<[1], [0], [0], [1], [0, 0, 1, 1], [], []>} : vector<8x64xf32>, vector<64x128xf32>, vector<8x128xf32> -> vector<8x128xf32>
    %30 = vector.broadcast %8 : vector<1x128xf32> to vector<8x128xf32>
    %31 = arith.addf %29, %30 : vector<8x128xf32>
    %32 = arith.negf %31 : vector<8x128xf32>
    %33 = math.exp %32 : vector<8x128xf32>
    %cst_15 = arith.constant 1.000000e+00 : f32
    %34 = vector.broadcast %cst_15 : f32 to vector<8x128xf32>
    %35 = arith.addf %34, %33 : vector<8x128xf32>
    %36 = arith.divf %34, %35 : vector<8x128xf32>
    %37 = vector.extract_strided_slice %36 {offsets = [0, 0], sizes = [8, 32], strides = [1, 1]} : vector<8x128xf32> to vector<8x32xf32>
    %38 = vector.extract_strided_slice %36 {offsets = [0, 32], sizes = [8, 32], strides = [1, 1]} : vector<8x128xf32> to vector<8x32xf32>
    %39 = vector.extract_strided_slice %36 {offsets = [0, 96], sizes = [8, 32], strides = [1, 1]} : vector<8x128xf32> to vector<8x32xf32>
    %40 = vector.extract_strided_slice %31 {offsets = [0, 64], sizes = [8, 32], strides = [1, 1]} : vector<8x128xf32> to vector<8x32xf32>
    %41 = math.tanh %40 : vector<8x32xf32>
    %42 = arith.mulf %38, %9 : vector<8x32xf32>
    %43 = arith.mulf %37, %41 : vector<8x32xf32>
    %44 = arith.addf %42, %43 : vector<8x32xf32>
    %45 = math.tanh %44 : vector<8x32xf32>
    %46 = arith.mulf %39, %45 : vector<8x32xf32>
    %47 = vector.extract_strided_slice %5 {offsets = [8, 0], sizes = [8, 128], strides = [1, 1]} : vector<64x128xf32> to vector<8x128xf32>
    %cst_16 = arith.constant dense<0.000000e+00> : vector<8x128xf32>
    %48 = tpu.matmul %27, %6, %cst_16 {dimension_numbers = #tpu.dot_dimension_numbers<[1], [0], [0], [1], [0, 0, 1, 1], [], []>} : vector<8x32xf32>, vector<32x128xf32>, vector<8x128xf32> -> vector<8x128xf32>
    %49 = arith.addf %47, %48 : vector<8x128xf32>
    %50 = arith.negf %49 : vector<8x128xf32>
    %51 = math.exp %50 : vector<8x128xf32>
    %cst_17 = arith.constant 1.000000e+00 : f32
    %52 = vector.broadcast %cst_17 : f32 to vector<8x128xf32>
    %53 = arith.addf %52, %51 : vector<8x128xf32>
    %54 = arith.divf %52, %53 : vector<8x128xf32>
    %55 = vector.extract_strided_slice %54 {offsets = [0, 0], sizes = [8, 32], strides = [1, 1]} : vector<8x128xf32> to vector<8x32xf32>
    %56 = vector.extract_strided_slice %54 {offsets = [0, 32], sizes = [8, 32], strides = [1, 1]} : vector<8x128xf32> to vector<8x32xf32>
    %57 = vector.extract_strided_slice %54 {offsets = [0, 96], sizes = [8, 32], strides = [1, 1]} : vector<8x128xf32> to vector<8x32xf32>
    %58 = vector.extract_strided_slice %49 {offsets = [0, 64], sizes = [8, 32], strides = [1, 1]} : vector<8x128xf32> to vector<8x32xf32>
    %59 = math.tanh %58 : vector<8x32xf32>
    %60 = arith.mulf %56, %25 : vector<8x32xf32>
    %61 = arith.mulf %55, %59 : vector<8x32xf32>
    %62 = arith.addf %60, %61 : vector<8x32xf32>
    %63 = math.tanh %62 : vector<8x32xf32>
    %64 = arith.mulf %57, %63 : vector<8x32xf32>
    %65 = tpu.concatenate %64, %46 in 1 : vector<8x32xf32>, vector<8x32xf32> -> vector<8x64xf32>
    %cst_18 = arith.constant dense<0.000000e+00> : vector<8x128xf32>
    %66 = tpu.matmul %65, %7, %cst_18 {dimension_numbers = #tpu.dot_dimension_numbers<[1], [0], [0], [1], [0, 0, 1, 1], [], []>} : vector<8x64xf32>, vector<64x128xf32>, vector<8x128xf32> -> vector<8x128xf32>
    %67 = vector.broadcast %8 : vector<1x128xf32> to vector<8x128xf32>
    %68 = arith.addf %66, %67 : vector<8x128xf32>
    %69 = arith.negf %68 : vector<8x128xf32>
    %70 = math.exp %69 : vector<8x128xf32>
    %cst_19 = arith.constant 1.000000e+00 : f32
    %71 = vector.broadcast %cst_19 : f32 to vector<8x128xf32>
    %72 = arith.addf %71, %70 : vector<8x128xf32>
    %73 = arith.divf %71, %72 : vector<8x128xf32>
    %74 = vector.extract_strided_slice %73 {offsets = [0, 0], sizes = [8, 32], strides = [1, 1]} : vector<8x128xf32> to vector<8x32xf32>
    %75 = vector.extract_strided_slice %73 {offsets = [0, 32], sizes = [8, 32], strides = [1, 1]} : vector<8x128xf32> to vector<8x32xf32>
    %76 = vector.extract_strided_slice %73 {offsets = [0, 96], sizes = [8, 32], strides = [1, 1]} : vector<8x128xf32> to vector<8x32xf32>
    %77 = vector.extract_strided_slice %68 {offsets = [0, 64], sizes = [8, 32], strides = [1, 1]} : vector<8x128xf32> to vector<8x32xf32>
    %78 = math.tanh %77 : vector<8x32xf32>
    %79 = arith.mulf %75, %44 : vector<8x32xf32>
    %80 = arith.mulf %74, %78 : vector<8x32xf32>
    %81 = arith.addf %79, %80 : vector<8x32xf32>
    %82 = math.tanh %81 : vector<8x32xf32>
    %83 = arith.mulf %76, %82 : vector<8x32xf32>
    %84 = vector.extract_strided_slice %5 {offsets = [16, 0], sizes = [8, 128], strides = [1, 1]} : vector<64x128xf32> to vector<8x128xf32>
    %cst_20 = arith.constant dense<0.000000e+00> : vector<8x128xf32>
    %85 = tpu.matmul %64, %6, %cst_20 {dimension_numbers = #tpu.dot_dimension_numbers<[1], [0], [0], [1], [0, 0, 1, 1], [], []>} : vector<8x32xf32>, vector<32x128xf32>, vector<8x128xf32> -> vector<8x128xf32>
    %86 = arith.addf %84, %85 : vector<8x128xf32>
    %87 = arith.negf %86 : vector<8x128xf32>
    %88 = math.exp %87 : vector<8x128xf32>
    %cst_21 = arith.constant 1.000000e+00 : f32
    %89 = vector.broadcast %cst_21 : f32 to vector<8x128xf32>
    %90 = arith.addf %89, %88 : vector<8x128xf32>
    %91 = arith.divf %89, %90 : vector<8x128xf32>
    %92 = vector.extract_strided_slice %91 {offsets = [0, 0], sizes = [8, 32], strides = [1, 1]} : vector<8x128xf32> to vector<8x32xf32>
    %93 = vector.extract_strided_slice %91 {offsets = [0, 32], sizes = [8, 32], strides = [1, 1]} : vector<8x128xf32> to vector<8x32xf32>
    %94 = vector.extract_strided_slice %91 {offsets = [0, 96], sizes = [8, 32], strides = [1, 1]} : vector<8x128xf32> to vector<8x32xf32>
    %95 = vector.extract_strided_slice %86 {offsets = [0, 64], sizes = [8, 32], strides = [1, 1]} : vector<8x128xf32> to vector<8x32xf32>
    %96 = math.tanh %95 : vector<8x32xf32>
    %97 = arith.mulf %93, %62 : vector<8x32xf32>
    %98 = arith.mulf %92, %96 : vector<8x32xf32>
    %99 = arith.addf %97, %98 : vector<8x32xf32>
    %100 = math.tanh %99 : vector<8x32xf32>
    %101 = arith.mulf %94, %100 : vector<8x32xf32>
    %102 = tpu.concatenate %101, %83 in 1 : vector<8x32xf32>, vector<8x32xf32> -> vector<8x64xf32>
    %cst_22 = arith.constant dense<0.000000e+00> : vector<8x128xf32>
    %103 = tpu.matmul %102, %7, %cst_22 {dimension_numbers = #tpu.dot_dimension_numbers<[1], [0], [0], [1], [0, 0, 1, 1], [], []>} : vector<8x64xf32>, vector<64x128xf32>, vector<8x128xf32> -> vector<8x128xf32>
    %104 = vector.broadcast %8 : vector<1x128xf32> to vector<8x128xf32>
    %105 = arith.addf %103, %104 : vector<8x128xf32>
    %106 = arith.negf %105 : vector<8x128xf32>
    %107 = math.exp %106 : vector<8x128xf32>
    %cst_23 = arith.constant 1.000000e+00 : f32
    %108 = vector.broadcast %cst_23 : f32 to vector<8x128xf32>
    %109 = arith.addf %108, %107 : vector<8x128xf32>
    %110 = arith.divf %108, %109 : vector<8x128xf32>
    %111 = vector.extract_strided_slice %110 {offsets = [0, 0], sizes = [8, 32], strides = [1, 1]} : vector<8x128xf32> to vector<8x32xf32>
    %112 = vector.extract_strided_slice %110 {offsets = [0, 32], sizes = [8, 32], strides = [1, 1]} : vector<8x128xf32> to vector<8x32xf32>
    %113 = vector.extract_strided_slice %110 {offsets = [0, 96], sizes = [8, 32], strides = [1, 1]} : vector<8x128xf32> to vector<8x32xf32>
    %114 = vector.extract_strided_slice %105 {offsets = [0, 64], sizes = [8, 32], strides = [1, 1]} : vector<8x128xf32> to vector<8x32xf32>
    %115 = math.tanh %114 : vector<8x32xf32>
    %116 = arith.mulf %112, %81 : vector<8x32xf32>
    %117 = arith.mulf %111, %115 : vector<8x32xf32>
    %118 = arith.addf %116, %117 : vector<8x32xf32>
    %119 = math.tanh %118 : vector<8x32xf32>
    %120 = arith.mulf %113, %119 : vector<8x32xf32>
    %121 = vector.extract_strided_slice %5 {offsets = [24, 0], sizes = [8, 128], strides = [1, 1]} : vector<64x128xf32> to vector<8x128xf32>
    %cst_24 = arith.constant dense<0.000000e+00> : vector<8x128xf32>
    %122 = tpu.matmul %101, %6, %cst_24 {dimension_numbers = #tpu.dot_dimension_numbers<[1], [0], [0], [1], [0, 0, 1, 1], [], []>} : vector<8x32xf32>, vector<32x128xf32>, vector<8x128xf32> -> vector<8x128xf32>
    %123 = arith.addf %121, %122 : vector<8x128xf32>
    %124 = arith.negf %123 : vector<8x128xf32>
    %125 = math.exp %124 : vector<8x128xf32>
    %cst_25 = arith.constant 1.000000e+00 : f32
    %126 = vector.broadcast %cst_25 : f32 to vector<8x128xf32>
    %127 = arith.addf %126, %125 : vector<8x128xf32>
    %128 = arith.divf %126, %127 : vector<8x128xf32>
    %129 = vector.extract_strided_slice %128 {offsets = [0, 0], sizes = [8, 32], strides = [1, 1]} : vector<8x128xf32> to vector<8x32xf32>
    %130 = vector.extract_strided_slice %128 {offsets = [0, 32], sizes = [8, 32], strides = [1, 1]} : vector<8x128xf32> to vector<8x32xf32>
    %131 = vector.extract_strided_slice %128 {offsets = [0, 96], sizes = [8, 32], strides = [1, 1]} : vector<8x128xf32> to vector<8x32xf32>
    %132 = vector.extract_strided_slice %123 {offsets = [0, 64], sizes = [8, 32], strides = [1, 1]} : vector<8x128xf32> to vector<8x32xf32>
    %133 = math.tanh %132 : vector<8x32xf32>
    %134 = arith.mulf %130, %99 : vector<8x32xf32>
    %135 = arith.mulf %129, %133 : vector<8x32xf32>
    %136 = arith.addf %134, %135 : vector<8x32xf32>
    %137 = math.tanh %136 : vector<8x32xf32>
    %138 = arith.mulf %131, %137 : vector<8x32xf32>
    %139 = tpu.concatenate %138, %120 in 1 : vector<8x32xf32>, vector<8x32xf32> -> vector<8x64xf32>
    %cst_26 = arith.constant dense<0.000000e+00> : vector<8x128xf32>
    %140 = tpu.matmul %139, %7, %cst_26 {dimension_numbers = #tpu.dot_dimension_numbers<[1], [0], [0], [1], [0, 0, 1, 1], [], []>} : vector<8x64xf32>, vector<64x128xf32>, vector<8x128xf32> -> vector<8x128xf32>
    %141 = vector.broadcast %8 : vector<1x128xf32> to vector<8x128xf32>
    %142 = arith.addf %140, %141 : vector<8x128xf32>
    %143 = arith.negf %142 : vector<8x128xf32>
    %144 = math.exp %143 : vector<8x128xf32>
    %cst_27 = arith.constant 1.000000e+00 : f32
    %145 = vector.broadcast %cst_27 : f32 to vector<8x128xf32>
    %146 = arith.addf %145, %144 : vector<8x128xf32>
    %147 = arith.divf %145, %146 : vector<8x128xf32>
    %148 = vector.extract_strided_slice %147 {offsets = [0, 0], sizes = [8, 32], strides = [1, 1]} : vector<8x128xf32> to vector<8x32xf32>
    %149 = vector.extract_strided_slice %147 {offsets = [0, 32], sizes = [8, 32], strides = [1, 1]} : vector<8x128xf32> to vector<8x32xf32>
    %150 = vector.extract_strided_slice %147 {offsets = [0, 96], sizes = [8, 32], strides = [1, 1]} : vector<8x128xf32> to vector<8x32xf32>
    %151 = vector.extract_strided_slice %142 {offsets = [0, 64], sizes = [8, 32], strides = [1, 1]} : vector<8x128xf32> to vector<8x32xf32>
    %152 = math.tanh %151 : vector<8x32xf32>
    %153 = arith.mulf %149, %118 : vector<8x32xf32>
    %154 = arith.mulf %148, %152 : vector<8x32xf32>
    %155 = arith.addf %153, %154 : vector<8x32xf32>
    %156 = math.tanh %155 : vector<8x32xf32>
    %157 = arith.mulf %150, %156 : vector<8x32xf32>
    %158 = vector.extract_strided_slice %5 {offsets = [32, 0], sizes = [8, 128], strides = [1, 1]} : vector<64x128xf32> to vector<8x128xf32>
    %cst_28 = arith.constant dense<0.000000e+00> : vector<8x128xf32>
    %159 = tpu.matmul %138, %6, %cst_28 {dimension_numbers = #tpu.dot_dimension_numbers<[1], [0], [0], [1], [0, 0, 1, 1], [], []>} : vector<8x32xf32>, vector<32x128xf32>, vector<8x128xf32> -> vector<8x128xf32>
    %160 = arith.addf %158, %159 : vector<8x128xf32>
    %161 = arith.negf %160 : vector<8x128xf32>
    %162 = math.exp %161 : vector<8x128xf32>
    %cst_29 = arith.constant 1.000000e+00 : f32
    %163 = vector.broadcast %cst_29 : f32 to vector<8x128xf32>
    %164 = arith.addf %163, %162 : vector<8x128xf32>
    %165 = arith.divf %163, %164 : vector<8x128xf32>
    %166 = vector.extract_strided_slice %165 {offsets = [0, 0], sizes = [8, 32], strides = [1, 1]} : vector<8x128xf32> to vector<8x32xf32>
    %167 = vector.extract_strided_slice %165 {offsets = [0, 32], sizes = [8, 32], strides = [1, 1]} : vector<8x128xf32> to vector<8x32xf32>
    %168 = vector.extract_strided_slice %165 {offsets = [0, 96], sizes = [8, 32], strides = [1, 1]} : vector<8x128xf32> to vector<8x32xf32>
    %169 = vector.extract_strided_slice %160 {offsets = [0, 64], sizes = [8, 32], strides = [1, 1]} : vector<8x128xf32> to vector<8x32xf32>
    %170 = math.tanh %169 : vector<8x32xf32>
    %171 = arith.mulf %167, %136 : vector<8x32xf32>
    %172 = arith.mulf %166, %170 : vector<8x32xf32>
    %173 = arith.addf %171, %172 : vector<8x32xf32>
    %174 = math.tanh %173 : vector<8x32xf32>
    %175 = arith.mulf %168, %174 : vector<8x32xf32>
    %176 = tpu.concatenate %175, %157 in 1 : vector<8x32xf32>, vector<8x32xf32> -> vector<8x64xf32>
    %cst_30 = arith.constant dense<0.000000e+00> : vector<8x128xf32>
    %177 = tpu.matmul %176, %7, %cst_30 {dimension_numbers = #tpu.dot_dimension_numbers<[1], [0], [0], [1], [0, 0, 1, 1], [], []>} : vector<8x64xf32>, vector<64x128xf32>, vector<8x128xf32> -> vector<8x128xf32>
    %178 = vector.broadcast %8 : vector<1x128xf32> to vector<8x128xf32>
    %179 = arith.addf %177, %178 : vector<8x128xf32>
    %180 = arith.negf %179 : vector<8x128xf32>
    %181 = math.exp %180 : vector<8x128xf32>
    %cst_31 = arith.constant 1.000000e+00 : f32
    %182 = vector.broadcast %cst_31 : f32 to vector<8x128xf32>
    %183 = arith.addf %182, %181 : vector<8x128xf32>
    %184 = arith.divf %182, %183 : vector<8x128xf32>
    %185 = vector.extract_strided_slice %184 {offsets = [0, 0], sizes = [8, 32], strides = [1, 1]} : vector<8x128xf32> to vector<8x32xf32>
    %186 = vector.extract_strided_slice %184 {offsets = [0, 32], sizes = [8, 32], strides = [1, 1]} : vector<8x128xf32> to vector<8x32xf32>
    %187 = vector.extract_strided_slice %184 {offsets = [0, 96], sizes = [8, 32], strides = [1, 1]} : vector<8x128xf32> to vector<8x32xf32>
    %188 = vector.extract_strided_slice %179 {offsets = [0, 64], sizes = [8, 32], strides = [1, 1]} : vector<8x128xf32> to vector<8x32xf32>
    %189 = math.tanh %188 : vector<8x32xf32>
    %190 = arith.mulf %186, %155 : vector<8x32xf32>
    %191 = arith.mulf %185, %189 : vector<8x32xf32>
    %192 = arith.addf %190, %191 : vector<8x32xf32>
    %193 = math.tanh %192 : vector<8x32xf32>
    %194 = arith.mulf %187, %193 : vector<8x32xf32>
    %195 = vector.extract_strided_slice %5 {offsets = [40, 0], sizes = [8, 128], strides = [1, 1]} : vector<64x128xf32> to vector<8x128xf32>
    %cst_32 = arith.constant dense<0.000000e+00> : vector<8x128xf32>
    %196 = tpu.matmul %175, %6, %cst_32 {dimension_numbers = #tpu.dot_dimension_numbers<[1], [0], [0], [1], [0, 0, 1, 1], [], []>} : vector<8x32xf32>, vector<32x128xf32>, vector<8x128xf32> -> vector<8x128xf32>
    %197 = arith.addf %195, %196 : vector<8x128xf32>
    %198 = arith.negf %197 : vector<8x128xf32>
    %199 = math.exp %198 : vector<8x128xf32>
    %cst_33 = arith.constant 1.000000e+00 : f32
    %200 = vector.broadcast %cst_33 : f32 to vector<8x128xf32>
    %201 = arith.addf %200, %199 : vector<8x128xf32>
    %202 = arith.divf %200, %201 : vector<8x128xf32>
    %203 = vector.extract_strided_slice %202 {offsets = [0, 0], sizes = [8, 32], strides = [1, 1]} : vector<8x128xf32> to vector<8x32xf32>
    %204 = vector.extract_strided_slice %202 {offsets = [0, 32], sizes = [8, 32], strides = [1, 1]} : vector<8x128xf32> to vector<8x32xf32>
    %205 = vector.extract_strided_slice %202 {offsets = [0, 96], sizes = [8, 32], strides = [1, 1]} : vector<8x128xf32> to vector<8x32xf32>
    %206 = vector.extract_strided_slice %197 {offsets = [0, 64], sizes = [8, 32], strides = [1, 1]} : vector<8x128xf32> to vector<8x32xf32>
    %207 = math.tanh %206 : vector<8x32xf32>
    %208 = arith.mulf %204, %173 : vector<8x32xf32>
    %209 = arith.mulf %203, %207 : vector<8x32xf32>
    %210 = arith.addf %208, %209 : vector<8x32xf32>
    %211 = math.tanh %210 : vector<8x32xf32>
    %212 = arith.mulf %205, %211 : vector<8x32xf32>
    %213 = tpu.concatenate %212, %194 in 1 : vector<8x32xf32>, vector<8x32xf32> -> vector<8x64xf32>
    %cst_34 = arith.constant dense<0.000000e+00> : vector<8x128xf32>
    %214 = tpu.matmul %213, %7, %cst_34 {dimension_numbers = #tpu.dot_dimension_numbers<[1], [0], [0], [1], [0, 0, 1, 1], [], []>} : vector<8x64xf32>, vector<64x128xf32>, vector<8x128xf32> -> vector<8x128xf32>
    %215 = vector.broadcast %8 : vector<1x128xf32> to vector<8x128xf32>
    %216 = arith.addf %214, %215 : vector<8x128xf32>
    %217 = arith.negf %216 : vector<8x128xf32>
    %218 = math.exp %217 : vector<8x128xf32>
    %cst_35 = arith.constant 1.000000e+00 : f32
    %219 = vector.broadcast %cst_35 : f32 to vector<8x128xf32>
    %220 = arith.addf %219, %218 : vector<8x128xf32>
    %221 = arith.divf %219, %220 : vector<8x128xf32>
    %222 = vector.extract_strided_slice %221 {offsets = [0, 0], sizes = [8, 32], strides = [1, 1]} : vector<8x128xf32> to vector<8x32xf32>
    %223 = vector.extract_strided_slice %221 {offsets = [0, 32], sizes = [8, 32], strides = [1, 1]} : vector<8x128xf32> to vector<8x32xf32>
    %224 = vector.extract_strided_slice %221 {offsets = [0, 96], sizes = [8, 32], strides = [1, 1]} : vector<8x128xf32> to vector<8x32xf32>
    %225 = vector.extract_strided_slice %216 {offsets = [0, 64], sizes = [8, 32], strides = [1, 1]} : vector<8x128xf32> to vector<8x32xf32>
    %226 = math.tanh %225 : vector<8x32xf32>
    %227 = arith.mulf %223, %192 : vector<8x32xf32>
    %228 = arith.mulf %222, %226 : vector<8x32xf32>
    %229 = arith.addf %227, %228 : vector<8x32xf32>
    %230 = math.tanh %229 : vector<8x32xf32>
    %231 = arith.mulf %224, %230 : vector<8x32xf32>
    %232 = vector.extract_strided_slice %5 {offsets = [48, 0], sizes = [8, 128], strides = [1, 1]} : vector<64x128xf32> to vector<8x128xf32>
    %cst_36 = arith.constant dense<0.000000e+00> : vector<8x128xf32>
    %233 = tpu.matmul %212, %6, %cst_36 {dimension_numbers = #tpu.dot_dimension_numbers<[1], [0], [0], [1], [0, 0, 1, 1], [], []>} : vector<8x32xf32>, vector<32x128xf32>, vector<8x128xf32> -> vector<8x128xf32>
    %234 = arith.addf %232, %233 : vector<8x128xf32>
    %235 = arith.negf %234 : vector<8x128xf32>
    %236 = math.exp %235 : vector<8x128xf32>
    %cst_37 = arith.constant 1.000000e+00 : f32
    %237 = vector.broadcast %cst_37 : f32 to vector<8x128xf32>
    %238 = arith.addf %237, %236 : vector<8x128xf32>
    %239 = arith.divf %237, %238 : vector<8x128xf32>
    %240 = vector.extract_strided_slice %239 {offsets = [0, 0], sizes = [8, 32], strides = [1, 1]} : vector<8x128xf32> to vector<8x32xf32>
    %241 = vector.extract_strided_slice %239 {offsets = [0, 32], sizes = [8, 32], strides = [1, 1]} : vector<8x128xf32> to vector<8x32xf32>
    %242 = vector.extract_strided_slice %239 {offsets = [0, 96], sizes = [8, 32], strides = [1, 1]} : vector<8x128xf32> to vector<8x32xf32>
    %243 = vector.extract_strided_slice %234 {offsets = [0, 64], sizes = [8, 32], strides = [1, 1]} : vector<8x128xf32> to vector<8x32xf32>
    %244 = math.tanh %243 : vector<8x32xf32>
    %245 = arith.mulf %241, %210 : vector<8x32xf32>
    %246 = arith.mulf %240, %244 : vector<8x32xf32>
    %247 = arith.addf %245, %246 : vector<8x32xf32>
    %248 = math.tanh %247 : vector<8x32xf32>
    %249 = arith.mulf %242, %248 : vector<8x32xf32>
    %250 = tpu.concatenate %249, %231 in 1 : vector<8x32xf32>, vector<8x32xf32> -> vector<8x64xf32>
    %cst_38 = arith.constant dense<0.000000e+00> : vector<8x128xf32>
    %251 = tpu.matmul %250, %7, %cst_38 {dimension_numbers = #tpu.dot_dimension_numbers<[1], [0], [0], [1], [0, 0, 1, 1], [], []>} : vector<8x64xf32>, vector<64x128xf32>, vector<8x128xf32> -> vector<8x128xf32>
    %252 = vector.broadcast %8 : vector<1x128xf32> to vector<8x128xf32>
    %253 = arith.addf %251, %252 : vector<8x128xf32>
    %254 = arith.negf %253 : vector<8x128xf32>
    %255 = math.exp %254 : vector<8x128xf32>
    %cst_39 = arith.constant 1.000000e+00 : f32
    %256 = vector.broadcast %cst_39 : f32 to vector<8x128xf32>
    %257 = arith.addf %256, %255 : vector<8x128xf32>
    %258 = arith.divf %256, %257 : vector<8x128xf32>
    %259 = vector.extract_strided_slice %258 {offsets = [0, 0], sizes = [8, 32], strides = [1, 1]} : vector<8x128xf32> to vector<8x32xf32>
    %260 = vector.extract_strided_slice %258 {offsets = [0, 32], sizes = [8, 32], strides = [1, 1]} : vector<8x128xf32> to vector<8x32xf32>
    %261 = vector.extract_strided_slice %258 {offsets = [0, 96], sizes = [8, 32], strides = [1, 1]} : vector<8x128xf32> to vector<8x32xf32>
    %262 = vector.extract_strided_slice %253 {offsets = [0, 64], sizes = [8, 32], strides = [1, 1]} : vector<8x128xf32> to vector<8x32xf32>
    %263 = math.tanh %262 : vector<8x32xf32>
    %264 = arith.mulf %260, %229 : vector<8x32xf32>
    %265 = arith.mulf %259, %263 : vector<8x32xf32>
    %266 = arith.addf %264, %265 : vector<8x32xf32>
    %267 = math.tanh %266 : vector<8x32xf32>
    %268 = arith.mulf %261, %267 : vector<8x32xf32>
    %269 = vector.extract_strided_slice %5 {offsets = [56, 0], sizes = [8, 128], strides = [1, 1]} : vector<64x128xf32> to vector<8x128xf32>
    %cst_40 = arith.constant dense<0.000000e+00> : vector<8x128xf32>
    %270 = tpu.matmul %249, %6, %cst_40 {dimension_numbers = #tpu.dot_dimension_numbers<[1], [0], [0], [1], [0, 0, 1, 1], [], []>} : vector<8x32xf32>, vector<32x128xf32>, vector<8x128xf32> -> vector<8x128xf32>
    %271 = arith.addf %269, %270 : vector<8x128xf32>
    %272 = arith.negf %271 : vector<8x128xf32>
    %273 = math.exp %272 : vector<8x128xf32>
    %cst_41 = arith.constant 1.000000e+00 : f32
    %274 = vector.broadcast %cst_41 : f32 to vector<8x128xf32>
    %275 = arith.addf %274, %273 : vector<8x128xf32>
    %276 = arith.divf %274, %275 : vector<8x128xf32>
    %277 = vector.extract_strided_slice %276 {offsets = [0, 0], sizes = [8, 32], strides = [1, 1]} : vector<8x128xf32> to vector<8x32xf32>
    %278 = vector.extract_strided_slice %276 {offsets = [0, 32], sizes = [8, 32], strides = [1, 1]} : vector<8x128xf32> to vector<8x32xf32>
    %279 = vector.extract_strided_slice %276 {offsets = [0, 96], sizes = [8, 32], strides = [1, 1]} : vector<8x128xf32> to vector<8x32xf32>
    %280 = vector.extract_strided_slice %271 {offsets = [0, 64], sizes = [8, 32], strides = [1, 1]} : vector<8x128xf32> to vector<8x32xf32>
    %281 = math.tanh %280 : vector<8x32xf32>
    %282 = arith.mulf %278, %247 : vector<8x32xf32>
    %283 = arith.mulf %277, %281 : vector<8x32xf32>
    %284 = arith.addf %282, %283 : vector<8x32xf32>
    %285 = math.tanh %284 : vector<8x32xf32>
    %286 = arith.mulf %279, %285 : vector<8x32xf32>
    %287 = tpu.concatenate %286, %268 in 1 : vector<8x32xf32>, vector<8x32xf32> -> vector<8x64xf32>
    %cst_42 = arith.constant dense<0.000000e+00> : vector<8x128xf32>
    %288 = tpu.matmul %287, %7, %cst_42 {dimension_numbers = #tpu.dot_dimension_numbers<[1], [0], [0], [1], [0, 0, 1, 1], [], []>} : vector<8x64xf32>, vector<64x128xf32>, vector<8x128xf32> -> vector<8x128xf32>
    %289 = vector.broadcast %8 : vector<1x128xf32> to vector<8x128xf32>
    %290 = arith.addf %288, %289 : vector<8x128xf32>
    %291 = arith.negf %290 : vector<8x128xf32>
    %292 = math.exp %291 : vector<8x128xf32>
    %cst_43 = arith.constant 1.000000e+00 : f32
    %293 = vector.broadcast %cst_43 : f32 to vector<8x128xf32>
    %294 = arith.addf %293, %292 : vector<8x128xf32>
    %295 = arith.divf %293, %294 : vector<8x128xf32>
    %296 = vector.extract_strided_slice %295 {offsets = [0, 0], sizes = [8, 32], strides = [1, 1]} : vector<8x128xf32> to vector<8x32xf32>
    %297 = vector.extract_strided_slice %295 {offsets = [0, 32], sizes = [8, 32], strides = [1, 1]} : vector<8x128xf32> to vector<8x32xf32>
    %298 = vector.extract_strided_slice %295 {offsets = [0, 96], sizes = [8, 32], strides = [1, 1]} : vector<8x128xf32> to vector<8x32xf32>
    %299 = vector.extract_strided_slice %290 {offsets = [0, 64], sizes = [8, 32], strides = [1, 1]} : vector<8x128xf32> to vector<8x32xf32>
    %300 = math.tanh %299 : vector<8x32xf32>
    %301 = arith.mulf %297, %266 : vector<8x32xf32>
    %302 = arith.mulf %296, %300 : vector<8x32xf32>
    %303 = arith.addf %301, %302 : vector<8x32xf32>
    %304 = math.tanh %303 : vector<8x32xf32>
    %305 = arith.mulf %298, %304 : vector<8x32xf32>
    %c0_44 = arith.constant 0 : index
    %c0_45 = arith.constant 0 : index
    %306 = vector.load %arg6[%c0_44, %c0_45] : memref<32x9xf32, #tpu.memory_space<vmem>>, vector<32x9xf32>
    %cst_46 = arith.constant dense<0.000000e+00> : vector<8x9xf32>
    %307 = tpu.matmul %305, %306, %cst_46 {dimension_numbers = #tpu.dot_dimension_numbers<[1], [0], [0], [1], [0, 0, 1, 1], [], []>} : vector<8x32xf32>, vector<32x9xf32>, vector<8x9xf32> -> vector<8x9xf32>
    %c0_47 = arith.constant 0 : index
    %c0_48 = arith.constant 0 : index
    %308 = vector.load %arg7[%c0_47, %c0_48] : memref<1x9xf32, #tpu.memory_space<vmem>>, vector<1x9xf32>
    %309 = vector.broadcast %308 : vector<1x9xf32> to vector<8x9xf32>
    %310 = arith.addf %307, %309 : vector<8x9xf32>
    %c0_49 = arith.constant 0 : index
    %c0_50 = arith.constant 0 : index
    %311 = vector.load %arg8[%c0_49, %c0_50] : memref<8x9xf32, #tpu.memory_space<vmem>>, vector<8x9xf32>
    tpu.vector_store %arg8[%c0_49, %c0_50], %310 {strides = array<i32>} : memref<8x9xf32, #tpu.memory_space<vmem>>, vector<8x9xf32>,
    return
  }
}

</mosaic_0001>

<bundles_post_ra>
// kernel: sep_lstm_forward.1
= control target key start
LH: loop header
LB: loop body
LE: loop exit
PB: predicated region body
PF: predicated region fallthrough
CT: control target
= control target key end

     0   :  { %vm70_vm0 = vcmask 1043456   ;;  %vm45_vm1 = vcmask 31744   ;;  %v2494_v0 = vmov 0.0   ;;  %vm2495_vm2 = vmmov 0   ;;  %s2496_s20 = smov 64   ;;  %s2497_s21 = smov 32   ;;  %s3102_s1 = inlined_call_operand.vmem [shape: f32[4,128], index: 1, kind: input, shape index: {}]   ;;  %s3103_s2 = inlined_call_operand.vmem [shape: f32[32,128], index: 2, kind: input, shape index: {}]   ;;  %s3104_s0 = inlined_call_operand.vmem [shape: f32[64,4], index: 0, kind: input, shape index: {}]   ;;  %s3105_s3 = inlined_call_operand.vmem [shape: f32[1,128], index: 3, kind: input, shape index: {}]   ;;  %s3106_s4 = inlined_call_operand.vmem [shape: f32[64,128], index: 4, kind: input, shape index: {}]   ;;  %s3107_s5 = inlined_call_operand.vmem [shape: f32[1,128], index: 5, kind: input, shape index: {}]   ;;  %s3108_s6 = inlined_call_operand.vmem [shape: f32[32,9], index: 6, kind: input, shape index: {}]   ;;  %s3109_s7 = inlined_call_operand.vmem [shape: f32[1,9], index: 7, kind: input, shape index: {}]   ;;  %s3110_s8 = inlined_call_operand.vmem [shape: f32[8,9], index: 8, kind: output, shape index: {}]  }
   0x1   :  { %2097 = vmatprep.subr.mxu1 %v2494_v0  ;;  %v37_v1 = vld [vmem:[%s3102_s1] sm:$0xf]  ;;  %v2550_v2 = vld [vmem:[%s3103_s2 + $0x18] sm:$0xff]  ;;  %2105 = vmatprep.mubr.msk.f32.mxu1 %vm2495_vm2, %v2494_v0  ;;  %v30_v4 = vld [vmem:[%s3104_s0 + $0x8] sm:$0xff]  ;;  %vm192_vm3 = vcmask 261120   ;;  %vm302_vm4 = vcmask 523264  }
   0x2   :  { %v29_v3 = vld [vmem:[%s3104_s0] sm:$0xff]  ;;  %2083 = vmatprep.subr.msk.mxu0 %vm70_vm0, %v37_v1  ;;  %2098 = vmatpush3.msra.mxu1 %v2550_v2  ;;  %v2564_v5 = vld [vmem:[%s3103_s2 + $0x10] sm:$0xff]  ;;  %v2572_v6 = vld [vmem:[%s3103_s2 + $0x8] sm:$0xff]  ;;  %vm1907_vm5 = vcmask 72704  }
   0x3   :  { %2084 = vmatpush3.msk.msra.mxu0 %vm70_vm0, %v37_v1  ;;  %2085 = vmatprep.mubr.msk.f32.mxu0 %vm45_vm1, %v29_v3  ;;  %v2580_v7 = vld [vmem:[%s3103_s2] sm:$0xff]  ;;  %v31_v25 = vld [vmem:[%s3104_s0 + $0x10] sm:$0xff]  ;;  %v32_v26 = vld [vmem:[%s3104_s0 + $0x18] sm:$0xff] }
   0x4   :  { %2099 = vmatprep.subr.mxu1 %v2494_v0  ;;  %2086 = vmatmul.mubr.msk.f32.vlgmr.msra.gmra.mxu0 %vm45_vm1, %v30_v4  ;;  %v2602_v9 = vld [vmem:[%s3105_s3] ss:$0 sm:$0xff]  ;;  %v2619_v27 = vld [vmem:[%s3106_s4 + $0x38] sm:$0xff]  ;;  %v2625_v28 = vld [vmem:[%s3106_s4 + $0x30] sm:$0xff] }
   0x5   :  { %2100 = vmatpush3.msra.mxu1 %v2564_v5  ;;  %2108 = vmatprep.subr.mxu0 %v2494_v0  ;;  %v33_v29 = vld [vmem:[%s3104_s0 + $0x20] sm:$0xff]  ;;  %v2636_v30 = vld [vmem:[%s3106_s4 + $0x28] sm:$0xff]  ;;  %v35_v33 = vld [vmem:[%s3104_s0 + $0x30] sm:$0xff] }
   0x6   :  { %2101 = vmatprep.subr.mxu1 %v2494_v0  ;;  %2088 = vmatprep.mubr.msk.f32.mxu0 %vm45_vm1, %v31_v25  ;;  %v34_v31 = vld [vmem:[%s3104_s0 + $0x28] sm:$0xff]  ;;  %v2647_v32 = vld [vmem:[%s3106_s4 + $0x20] sm:$0xff]  ;;  %v2658_v34 = vld [vmem:[%s3106_s4 + $0x18] sm:$0xff] }
   0x7   :  { %2102 = vmatpush3.msra.mxu1 %v2572_v6  ;;  %2109 = vmatpush3.msra.mxu0 %v2619_v27  ;;  %v36_v35 = vld [vmem:[%s3104_s0 + $0x38] sm:$0xff]  ;;  %v2670_v37 = vld [vmem:[%s3106_s4 + $0x10] sm:$0xff]  ;;  %v2678_v38 = vld [vmem:[%s3106_s4 + $0x8] sm:$0xff] }
   0x8   :  { %2103 = vmatprep.subr.mxu1 %v2494_v0  ;;  %2110 = vmatprep.subr.mxu0 %v2494_v0  ;;  %v2687_v39 = vld [vmem:[%s3106_s4] sm:$0xff] }
   0x9   :  { %2104 = vmatpush3.msra.mxu1 %v2580_v7  ;;  %2089 = vmatmul.mubr.msk.f32.gmra.mxu0 %vm45_vm1, %v32_v26  ;;  %v2742_v51 = vld [vmem:[%s3107_s5] ss:$0 sm:$0xff] }
   0xa   :  { %2106 = vmatmul.mubr.f32.vlgmr.msra.gmra.mxu1 %v2494_v0  ;;  %2127 = vmatprep.subr.mxu1 %v2494_v0 }
   0xb   :  { %2128 = vmatpush3.msra.mxu1 %v2550_v2  ;;  %2135 = vmatprep.mubr.msk.f32.mxu1 %vm2495_vm2, %v2494_v0 }
   0xc   :  { %2129 = vmatprep.subr.mxu1 %v2494_v0  ;;  %2111 = vmatpush3.msra.mxu0 %v2625_v28 }
   0xd   :  { %2130 = vmatpush3.msra.mxu1 %v2564_v5  ;;  %2091 = vmatprep.mubr.msk.f32.mxu0 %vm45_vm1, %v33_v29 }
   0xe   :  { %2131 = vmatprep.subr.mxu1 %v2494_v0  ;;  %2112 = vmatprep.subr.mxu0 %v2494_v0 }
   0xf   :  { %2132 = vmatpush3.msra.mxu1 %v2572_v6  ;;  %2113 = vmatpush3.msra.mxu0 %v2636_v30 }
  0x10   :  { %2133 = vmatprep.subr.mxu1 %v2494_v0  ;;  %2114 = vmatprep.subr.mxu0 %v2494_v0 }
  0x11   :  { %2134 = vmatpush3.msra.mxu1 %v2580_v7  ;;  %2092 = vmatmul.mubr.msk.f32.gmra.mxu0 %vm45_vm1, %v34_v31 }
  0x12   :  { %2138 = vmatprep.subr.mxu1 %v2494_v0  ;;  %2115 = vmatpush3.msra.mxu0 %v2647_v32 }
  0x13   :  { %2094 = vmatprep.mubr.msk.f32.mxu0 %vm45_vm1, %v35_v33  ;;  %2116 = vmatprep.subr.mxu0 %v2494_v0 }
  0x14   :  { %2117 = vmatpush3.msra.mxu0 %v2658_v34 }
  0x15   :  { %2118 = vmatprep.subr.mxu0 %v2494_v0  ;;  %2095 = vmatmul.mubr.msk.f32.gmra.mxu0 %vm45_vm1, %v36_v35 }
  0x16   :  { %2119 = vmatpush3.msra.mxu0 %v2670_v37  ;;  %2124 = vmatprep.mubr.msk.f32.mxu0 %vm2495_vm2, %v2494_v0 }
  0x17   :  { %2120 = vmatprep.subr.mxu0 %v2494_v0 }
  0x18   :  { %2121 = vmatpush3.msra.mxu0 %v2678_v38 }
  0x19   :  { %2122 = vmatprep.subr.mxu0 %v2494_v0 }
  0x1a   :  { %2123 = vmatpush3.msra.mxu0 %v2687_v39 }
  0x1b   :  { %2157 = vmatprep.subr.mxu0 %v2494_v0 }
  0xc4   :  { %v2597_v8 = vpop.f32.mrf.mxu0 }
  0xc5   :  { %v146_v49 = vadd.f32 %v2597_v8, %v2602_v9 }
  0xc6   :  { %v140_v10 = vpop.f32.mrf.mxu0 }
  0xc7   :  { %v141_v11 = vadd.f32 %v2602_v9, %v140_v10 }
  0xc9   :  { %v2725_v44 = vpop.f32.mrf.mxu0 }
  0xca   :  { %v262_v12 = vpop.f32.mrf.mxu1 }
  0xcb   :  { %v266_v13 = vadd.f32 %v262_v12, %v141_v11  ;;  %v2727_v45 = vpop.f32.mrf.mxu0 }
  0xcc   :  { %v2107_v14 = vpop.f32.mrf.mxu1  ;;  %v151_v33 = vadd.f32 %v2602_v9, %v2727_v45 }
  0xcd   :  { %2352 = vtanh.f32 %v266_v13  ;;  %v1923_v16 = vmul.f32 -1.442695, %v266_v13 }
  0xcf   :  { %2354 = vpow2.f32 %v1923_v16 }
  0xd1   :  { %v2729_v46 = vpop.f32.mrf.mxu0 }
  0xd3   :  { %v2731_v47 = vpop.f32.mrf.mxu0 }
  0xd5   :  { %v2733_v48 = vpop.f32.mrf.mxu0 }
  0xd7   :  { %v2737_v50 = vpop.f32.mrf.mxu0 }
  0xda   :  { %v2353_v15 = vpop.eup %2352 }
  0xdb   :  { %276 = vrot.lane.b32.xlu0 %v2353_v15, %s2496_s20 }
  0xdc   :  { %v2355_v17 = vpop.eup %2354 }
  0xdd   :  { %v270_v18 = vadd.f32 1.0, %v2355_v17 }
  0xdf   :  { %2356 = vrcp.f32 %v270_v18 }
  0xec   :  { %v2357_v19 = vpop.eup %2356 }
  0xed   :  { %v274_v22 = vmul.f32 0.0, %v2357_v19 }
 0x14d   :  { %v277_v20 = vpop.permute.xlu0 %276 }
 0x14e   :  { %v279_v21 = vmul.f32 %v2357_v19, %v277_v20 }
 0x150   :  { %281 = vrot.lane.b32.xlu0 %v279_v21, %s2497_s21 }
 0x1c2   :  { %v282_v23 = vpop.permute.xlu0 %281 }
 0x1c3   :  { %v2607_v24 = vadd.f32 %v282_v23, %v274_v22 }
 0x1c5   :  { %2358 = vtanh.f32 %v2607_v24 }
 0x1d2   :  { %v2359_v36 = vpop.eup %2358 }
 0x1d3   :  { %287 = vrot.lane.b32.xlu1 %v2359_v36, %s2496_s20 }
 0x245   :  { %v288_v40 = vpop.permute.xlu1 %287 }
 0x246   :  { %v290_v41 = vmul.f32 %v2357_v19, %v288_v40 }
 0x248   :  { %292 = vrot.lane.b32.xlu1 %v290_v41, %s2497_s21 }
 0x2ba   :  { %v293_v42 = vpop.permute.xlu1 %292 }
 0x2bb   :  { %v295_v43 = vsel %vm192_vm3, %v293_v42, 0.0  ;;  %2136 = vmatmul.mubr.msk.f32.vlgmr.msra.gmra.mxu1 %vm192_vm3, %v293_v42 }
 0x2bc   :  { %2125 = vmatmul.mubr.msk.f32.vlgmr.msra.gmra.mxu0 %vm302_vm4, %v295_v43  ;;  %2139 = vmatpush3.msra.mxu1 %v2619_v27 }
 0x2bd   :  { %2140 = vmatprep.subr.mxu1 %v2494_v0  ;;  %2158 = vmatpush3.msra.mxu0 %v2550_v2 }
 0x2be   :  { %2141 = vmatpush3.msra.mxu1 %v2625_v28  ;;  %2159 = vmatprep.subr.mxu0 %v2494_v0 }
 0x2bf   :  { %2142 = vmatprep.subr.mxu1 %v2494_v0  ;;  %2160 = vmatpush3.msra.mxu0 %v2564_v5 }
 0x2c0   :  { %2143 = vmatpush3.msra.mxu1 %v2636_v30  ;;  %2161 = vmatprep.subr.mxu0 %v2494_v0 }
 0x2c1   :  { %2144 = vmatprep.subr.mxu1 %v2494_v0  ;;  %2162 = vmatpush3.msra.mxu0 %v2572_v6 }
 0x2c2   :  { %2145 = vmatpush3.msra.mxu1 %v2647_v32  ;;  %2163 = vmatprep.subr.mxu0 %v2494_v0 }
 0x2c3   :  { %2146 = vmatprep.subr.mxu1 %v2494_v0  ;;  %2164 = vmatpush3.msra.mxu0 %v2580_v7 }
 0x2c4   :  { %2147 = vmatpush3.msra.mxu1 %v2658_v34  ;;  %2165 = vmatprep.mubr.msk.f32.mxu0 %vm2495_vm2, %v2494_v0 }
 0x2c5   :  { %2148 = vmatprep.subr.mxu1 %v2494_v0  ;;  %2154 = vmatprep.mubr.msk.f32.mxu1 %vm2495_vm2, %v2494_v0 }
 0x2c6   :  { %2149 = vmatpush3.msra.mxu1 %v2670_v37  ;;  %2168 = vmatprep.subr.mxu0 %v2494_v0 }
 0x2c7   :  { %2150 = vmatprep.subr.mxu1 %v2494_v0 }
 0x2c8   :  { %2151 = vmatpush3.msra.mxu1 %v2678_v38 }
 0x2c9   :  { %2152 = vmatprep.subr.mxu1 %v2494_v0 }
 0x2ca   :  { %2153 = vmatpush3.msra.mxu1 %v2687_v39 }
 0x2cb   :  { %2187 = vmatprep.subr.mxu1 %v2494_v0 }
 0x37b   :  { %v468_v52 = vpop.f32.mrf.mxu1 }
 0x37c   :  { %v472_v53 = vadd.f32 %v468_v52, %v146_v49  ;;  %v372_v54 = vpop.f32.mrf.mxu0 }
 0x37d   :  { %v373_v55 = vadd.f32 %v2742_v51, %v372_v54  ;;  %v2137_v56 = vpop.f32.mrf.mxu1 }
 0x37e   :  { %2360 = vtanh.f32 %v472_v53  ;;  %v2126_v57 = vpop.f32.mrf.mxu0  ;;  %v1928_v60 = vmul.f32 -1.442695, %v472_v53 }
 0x37f   :  { %2362 = vtanh.f32 %v373_v55  ;;  %v1926_v61 = vmul.f32 -1.442695, %v373_v55 }
 0x380   :  { %2364 = vpow2.f32 %v1928_v60 }
 0x381   :  { %2366 = vpow2.f32 %v1926_v61 }
 0x38b   :  { %v2361_v58 = vpop.eup %2360 }
 0x38c   :  { %v2363_v59 = vpop.eup %2362  ;;  %482 = vrot.lane.b32.xlu1 %v2361_v58, %s2496_s20 }
 0x38d   :  { %385 = vrot.lane.b32.xlu0 %v2363_v59, %s2496_s20  ;;  %v2365_v62 = vpop.eup %2364 }
 0x38e   :  { %v2367_v63 = vpop.eup %2366  ;;  %v476_v1 = vadd.f32 1.0, %v2365_v62 }
 0x38f   :  { %v379_v3 = vadd.f32 1.0, %v2367_v63 }
 0x390   :  { %2368 = vrcp.f32 %v476_v1 }
 0x391   :  { %2370 = vrcp.f32 %v379_v3 }
 0x39d   :  { %v2369_v4 = vpop.eup %2368 }
 0x39e   :  { %v2371_v10 = vpop.eup %2370  ;;  %v480_v14 = vmul.f32 %v2369_v4, %v2607_v24 }
 0x39f   :  { %v383_v16 = vmul.f32 0.0, %v2371_v10 }
 0x3fe   :  { %v483_v8 = vpop.permute.xlu1 %482 }
 0x3ff   :  { %v485_v11 = vmul.f32 %v2369_v4, %v483_v8  ;;  %v386_v12 = vpop.permute.xlu0 %385 }
 0x400   :  { %v388_v13 = vmul.f32 %v2371_v10, %v386_v12 }
 0x401   :  { %487 = vrot.lane.b32.xlu1 %v485_v11, %s2497_s21 }
 0x402   :  { %390 = vrot.lane.b32.xlu0 %v388_v13, %s2497_s21 }
 0x473   :  { %v488_v15 = vpop.permute.xlu1 %487 }
 0x474   :  { %v2750_v17 = vadd.f32 %v488_v15, %v480_v14  ;;  %v391_v18 = vpop.permute.xlu0 %390 }
 0x475   :  { %v2752_v19 = vadd.f32 %v391_v18, %v383_v16 }
 0x476   :  { %2372 = vtanh.f32 %v2750_v17 }
 0x477   :  { %2374 = vtanh.f32 %v2752_v19 }
 0x483   :  { %v2373_v20 = vpop.eup %2372 }
 0x484   :  { %v2375_v21 = vpop.eup %2374  ;;  %493 = vrot.lane.b32.xlu1 %v2373_v20, %s2496_s20 }
 0x485   :  { %396 = vrot.lane.b32.xlu0 %v2375_v21, %s2496_s20  ;;  %v156_v21 = vadd.f32 %v2725_v44, %v2602_v9 }
 0x4f6   :  { %v494_v22 = vpop.permute.xlu1 %493 }
 0x4f7   :  { %v496_v23 = vmul.f32 %v2369_v4, %v494_v22  ;;  %v397_v24 = vpop.permute.xlu0 %396 }
 0x4f8   :  { %v399_v25 = vmul.f32 %v2371_v10, %v397_v24 }
 0x4f9   :  { %498 = vrot.lane.b32.xlu0 %v496_v23, %s2497_s21 }
 0x4fa   :  { %502 = vrot.lane.b32.xlu1 %v399_v25, %s2496_s20 }
 0x56b   :  { %v499_v26 = vpop.permute.xlu0 %498 }
 0x56c   :  { %v503_v29 = vpop.permute.xlu1 %502  ;;  %2166 = vmatmul.mubr.msk.f32.vlgmr.msra.gmra.mxu0 %vm192_vm3, %v499_v26 }
 0x56d   :  { %v505_v31 = vsel %vm192_vm3, %v499_v26, %v503_v29  ;;  %2169 = vmatpush3.msra.mxu0 %v2619_v27  ;;  %2184 = vmatprep.mubr.msk.f32.mxu0 %vm2495_vm2, %v2494_v0 }
 0x56e   :  { %2155 = vmatmul.mubr.msk.f32.vlgmr.msra.gmra.mxu1 %vm302_vm4, %v505_v31  ;;  %2170 = vmatprep.subr.mxu0 %v2494_v0 }
 0x56f   :  { %2171 = vmatpush3.msra.mxu0 %v2625_v28  ;;  %2188 = vmatpush3.msra.mxu1 %v2550_v2 }
 0x570   :  { %2172 = vmatprep.subr.mxu0 %v2494_v0  ;;  %2189 = vmatprep.subr.mxu1 %v2494_v0 }
 0x571   :  { %2173 = vmatpush3.msra.mxu0 %v2636_v30  ;;  %2190 = vmatpush3.msra.mxu1 %v2564_v5 }
 0x572   :  { %2174 = vmatprep.subr.mxu0 %v2494_v0  ;;  %2191 = vmatprep.subr.mxu1 %v2494_v0 }
 0x573   :  { %2175 = vmatpush3.msra.mxu0 %v2647_v32  ;;  %2192 = vmatpush3.msra.mxu1 %v2572_v6 }
 0x574   :  { %2176 = vmatprep.subr.mxu0 %v2494_v0  ;;  %2193 = vmatprep.subr.mxu1 %v2494_v0 }
 0x575   :  { %2177 = vmatpush3.msra.mxu0 %v2658_v34  ;;  %2194 = vmatpush3.msra.mxu1 %v2580_v7 }
 0x576   :  { %2178 = vmatprep.subr.mxu0 %v2494_v0  ;;  %2195 = vmatprep.mubr.msk.f32.mxu1 %vm2495_vm2, %v2494_v0 }
 0x577   :  { %2179 = vmatpush3.msra.mxu0 %v2670_v37  ;;  %2198 = vmatprep.subr.mxu1 %v2494_v0 }
 0x578   :  { %2180 = vmatprep.subr.mxu0 %v2494_v0 }
 0x579   :  { %2181 = vmatpush3.msra.mxu0 %v2678_v38 }
 0x57a   :  { %2182 = vmatprep.subr.mxu0 %v2494_v0 }
 0x57b   :  { %2183 = vmatpush3.msra.mxu0 %v2687_v39 }
 0x57c   :  { %2217 = vmatprep.subr.mxu0 %v2494_v0 }
 0x62c   :  { %v671_v35 = vpop.f32.mrf.mxu0 }
 0x62d   :  { %v675_v36 = vadd.f32 %v671_v35, %v151_v33 }
 0x62e   :  { %v575_v40 = vpop.f32.mrf.mxu1  ;;  %v2167_v41 = vpop.f32.mrf.mxu0 }
 0x62f   :  { %2376 = vtanh.f32 %v675_v36  ;;  %v576_v42 = vadd.f32 %v2742_v51, %v575_v40  ;;  %v1932_v53 = vmul.f32 -1.442695, %v675_v36 }
 0x630   :  { %v2156_v43 = vpop.f32.mrf.mxu1 }
 0x631   :  { %2378 = vtanh.f32 %v576_v42  ;;  %v1930_v54 = vmul.f32 -1.442695, %v576_v42 }
 0x632   :  { %2380 = vpow2.f32 %v1932_v53 }
 0x633   :  { %2382 = vpow2.f32 %v1930_v54 }
 0x63c   :  { %v2377_v49 = vpop.eup %2376 }
 0x63d   :  { %685 = vrot.lane.b32.xlu1 %v2377_v49, %s2496_s20 }
 0x63e   :  { %v2379_v52 = vpop.eup %2378 }
 0x63f   :  { %588 = vrot.lane.b32.xlu0 %v2379_v52, %s2496_s20  ;;  %v2381_v45 = vpop.eup %2380 }
 0x640   :  { %v2383_v55 = vpop.eup %2382  ;;  %v679_v56 = vadd.f32 1.0, %v2381_v45 }
 0x641   :  { %v582_v57 = vadd.f32 1.0, %v2383_v55 }
 0x642   :  { %2384 = vrcp.f32 %v679_v56 }
 0x643   :  { %2386 = vrcp.f32 %v582_v57 }
 0x64f   :  { %v2385_v58 = vpop.eup %2384 }
 0x650   :  { %v2387_v61 = vpop.eup %2386  ;;  %v683_v1 = vmul.f32 %v2385_v58, %v2750_v17 }
 0x651   :  { %v586_v8 = vmul.f32 %v2387_v61, %v2752_v19 }
 0x6af   :  { %v686_v59 = vpop.permute.xlu1 %685 }
 0x6b0   :  { %v688_v60 = vmul.f32 %v2385_v58, %v686_v59 }
 0x6b1   :  { %v589_v62 = vpop.permute.xlu0 %588 }
 0x6b2   :  { %690 = vrot.lane.b32.xlu1 %v688_v60, %s2497_s21  ;;  %v591_v63 = vmul.f32 %v2387_v61, %v589_v62 }
 0x6b4   :  { %593 = vrot.lane.b32.xlu0 %v591_v63, %s2497_s21 }
 0x724   :  { %v691_v3 = vpop.permute.xlu1 %690 }
 0x725   :  { %v2799_v4 = vadd.f32 %v691_v3, %v683_v1 }
 0x726   :  { %v594_v10 = vpop.permute.xlu0 %593 }
 0x727   :  { %2388 = vtanh.f32 %v2799_v4  ;;  %v2803_v11 = vadd.f32 %v594_v10, %v586_v8 }
 0x729   :  { %2390 = vtanh.f32 %v2803_v11 }
 0x734   :  { %v2389_v12 = vpop.eup %2388 }
 0x735   :  { %696 = vrot.lane.b32.xlu1 %v2389_v12, %s2496_s20  ;;  %v161_v12 = vadd.f32 %v2602_v9, %v2731_v47 }
 0x736   :  { %v2391_v13 = vpop.eup %2390 }
 0x737   :  { %599 = vrot.lane.b32.xlu0 %v2391_v13, %s2496_s20 }
 0x7a7   :  { %v697_v14 = vpop.permute.xlu1 %696 }
 0x7a8   :  { %v699_v15 = vmul.f32 %v2385_v58, %v697_v14 }
 0x7a9   :  { %v600_v16 = vpop.permute.xlu0 %599 }
 0x7aa   :  { %701 = vrot.lane.b32.xlu0 %v699_v15, %s2497_s21  ;;  %v602_v17 = vmul.f32 %v2387_v61, %v600_v16 }
 0x7ac   :  { %705 = vrot.lane.b32.xlu1 %v602_v17, %s2496_s20 }
 0x81c   :  { %v702_v18 = vpop.permute.xlu0 %701 }
 0x81d   :  { %2196 = vmatmul.mubr.msk.f32.vlgmr.msra.gmra.mxu1 %vm192_vm3, %v702_v18 }
 0x81e   :  { %2199 = vmatpush3.msra.mxu1 %v2619_v27  ;;  %2214 = vmatprep.mubr.msk.f32.mxu1 %vm2495_vm2, %v2494_v0  ;;  %v706_v19 = vpop.permute.xlu1 %705 }
 0x81f   :  { %2200 = vmatprep.subr.mxu1 %v2494_v0  ;;  %v708_v20 = vsel %vm192_vm3, %v702_v18, %v706_v19 }
 0x820   :  { %2201 = vmatpush3.msra.mxu1 %v2625_v28  ;;  %2185 = vmatmul.mubr.msk.f32.vlgmr.msra.gmra.mxu0 %vm302_vm4, %v708_v20 }
 0x821   :  { %2202 = vmatprep.subr.mxu1 %v2494_v0  ;;  %2218 = vmatpush3.msra.mxu0 %v2550_v2 }
 0x822   :  { %2203 = vmatpush3.msra.mxu1 %v2636_v30  ;;  %2219 = vmatprep.subr.mxu0 %v2494_v0 }
 0x823   :  { %2204 = vmatprep.subr.mxu1 %v2494_v0  ;;  %2220 = vmatpush3.msra.mxu0 %v2564_v5 }
 0x824   :  { %2205 = vmatpush3.msra.mxu1 %v2647_v32  ;;  %2221 = vmatprep.subr.mxu0 %v2494_v0 }
 0x825   :  { %2206 = vmatprep.subr.mxu1 %v2494_v0  ;;  %2222 = vmatpush3.msra.mxu0 %v2572_v6 }
 0x826   :  { %2207 = vmatpush3.msra.mxu1 %v2658_v34  ;;  %2223 = vmatprep.subr.mxu0 %v2494_v0 }
 0x827   :  { %2208 = vmatprep.subr.mxu1 %v2494_v0  ;;  %2224 = vmatpush3.msra.mxu0 %v2580_v7 }
 0x828   :  { %2209 = vmatpush3.msra.mxu1 %v2670_v37  ;;  %2225 = vmatprep.mubr.msk.f32.mxu0 %vm2495_vm2, %v2494_v0 }
 0x829   :  { %2210 = vmatprep.subr.mxu1 %v2494_v0  ;;  %2228 = vmatprep.subr.mxu0 %v2494_v0 }
 0x82a   :  { %2211 = vmatpush3.msra.mxu1 %v2678_v38 }
 0x82b   :  { %2212 = vmatprep.subr.mxu1 %v2494_v0 }
 0x82c   :  { %2213 = vmatpush3.msra.mxu1 %v2687_v39 }
 0x82d   :  { %2247 = vmatprep.subr.mxu1 %v2494_v0 }
 0x8dd   :  { %v874_v22 = vpop.f32.mrf.mxu1 }
 0x8de   :  { %v878_v23 = vadd.f32 %v874_v22, %v156_v21 }
 0x8df   :  { %v2197_v24 = vpop.f32.mrf.mxu1 }
 0x8e0   :  { %2392 = vtanh.f32 %v878_v23  ;;  %v778_v25 = vpop.f32.mrf.mxu0  ;;  %v1936_v35 = vmul.f32 -1.442695, %v878_v23 }
 0x8e1   :  { %v779_v26 = vadd.f32 %v2742_v51, %v778_v25 }
 0x8e2   :  { %v2186_v29 = vpop.f32.mrf.mxu0 }
 0x8e3   :  { %2394 = vtanh.f32 %v779_v26  ;;  %v1934_v36 = vmul.f32 -1.442695, %v779_v26 }
 0x8e4   :  { %2396 = vpow2.f32 %v1936_v35 }
 0x8e5   :  { %2398 = vpow2.f32 %v1934_v36 }
 0x8ed   :  { %v2393_v31 = vpop.eup %2392 }
 0x8ee   :  { %888 = vrot.lane.b32.xlu1 %v2393_v31, %s2496_s20 }
 0x8f0   :  { %v2395_v33 = vpop.eup %2394 }
 0x8f1   :  { %791 = vrot.lane.b32.xlu0 %v2395_v33, %s2496_s20  ;;  %v2397_v44 = vpop.eup %2396 }
 0x8f2   :  { %v882_v40 = vadd.f32 1.0, %v2397_v44  ;;  %v2399_v41 = vpop.eup %2398 }
 0x8f3   :  { %v785_v42 = vadd.f32 1.0, %v2399_v41 }
 0x8f4   :  { %2400 = vrcp.f32 %v882_v40 }
 0x8f5   :  { %2402 = vrcp.f32 %v785_v42 }
 0x901   :  { %v2401_v43 = vpop.eup %2400 }
 0x902   :  { %v2403_v53 = vpop.eup %2402  ;;  %v886_v55 = vmul.f32 %v2401_v43, %v2799_v4 }
 0x903   :  { %v789_v58 = vmul.f32 %v2403_v53, %v2803_v11 }
 0x960   :  { %v889_v49 = vpop.permute.xlu1 %888 }
 0x961   :  { %v891_v52 = vmul.f32 %v2401_v43, %v889_v49 }
 0x963   :  { %893 = vrot.lane.b32.xlu1 %v891_v52, %s2497_s21  ;;  %v792_v54 = vpop.permute.xlu0 %791 }
 0x964   :  { %v794_v45 = vmul.f32 %v2403_v53, %v792_v54 }
 0x966   :  { %796 = vrot.lane.b32.xlu0 %v794_v45, %s2497_s21 }
 0x9d5   :  { %v894_v56 = vpop.permute.xlu1 %893 }
 0x9d6   :  { %v2849_v57 = vadd.f32 %v894_v56, %v886_v55 }
 0x9d8   :  { %2404 = vtanh.f32 %v2849_v57  ;;  %v797_v59 = vpop.permute.xlu0 %796 }
 0x9d9   :  { %v2853_v60 = vadd.f32 %v797_v59, %v789_v58 }
 0x9db   :  { %2406 = vtanh.f32 %v2853_v60 }
 0x9e5   :  { %v2405_v61 = vpop.eup %2404 }
 0x9e6   :  { %899 = vrot.lane.b32.xlu1 %v2405_v61, %s2496_s20 }
 0x9e8   :  { %v2407_v62 = vpop.eup %2406 }
 0x9e9   :  { %802 = vrot.lane.b32.xlu0 %v2407_v62, %s2496_s20 }
 0xa58   :  { %v900_v63 = vpop.permute.xlu1 %899 }
 0xa59   :  { %v902_v1 = vmul.f32 %v2401_v43, %v900_v63 }
 0xa5b   :  { %904 = vrot.lane.b32.xlu0 %v902_v1, %s2497_s21  ;;  %v803_v3 = vpop.permute.xlu0 %802 }
 0xa5c   :  { %v805_v4 = vmul.f32 %v2403_v53, %v803_v3 }
 0xa5e   :  { %908 = vrot.lane.b32.xlu1 %v805_v4, %s2496_s20 }
 0xacd   :  { %v905_v8 = vpop.permute.xlu0 %904 }
 0xace   :  { %2226 = vmatmul.mubr.msk.f32.vlgmr.msra.gmra.mxu0 %vm192_vm3, %v905_v8 }
 0xacf   :  { %2229 = vmatpush3.msra.mxu0 %v2619_v27  ;;  %2244 = vmatprep.mubr.msk.f32.mxu0 %vm2495_vm2, %v2494_v0 }
 0xad0   :  { %2230 = vmatprep.subr.mxu0 %v2494_v0  ;;  %v909_v10 = vpop.permute.xlu1 %908 }
 0xad1   :  { %2231 = vmatpush3.msra.mxu0 %v2625_v28  ;;  %v911_v11 = vsel %vm192_vm3, %v905_v8, %v909_v10 }
 0xad2   :  { %2232 = vmatprep.subr.mxu0 %v2494_v0  ;;  %2215 = vmatmul.mubr.msk.f32.vlgmr.msra.gmra.mxu1 %vm302_vm4, %v911_v11 }
 0xad3   :  { %2233 = vmatpush3.msra.mxu0 %v2636_v30  ;;  %2248 = vmatpush3.msra.mxu1 %v2550_v2 }
 0xad4   :  { %2234 = vmatprep.subr.mxu0 %v2494_v0  ;;  %2249 = vmatprep.subr.mxu1 %v2494_v0 }
 0xad5   :  { %2235 = vmatpush3.msra.mxu0 %v2647_v32  ;;  %2250 = vmatpush3.msra.mxu1 %v2564_v5 }
 0xad6   :  { %2236 = vmatprep.subr.mxu0 %v2494_v0  ;;  %2251 = vmatprep.subr.mxu1 %v2494_v0 }
 0xad7   :  { %2237 = vmatpush3.msra.mxu0 %v2658_v34  ;;  %2252 = vmatpush3.msra.mxu1 %v2572_v6 }
 0xad8   :  { %2238 = vmatprep.subr.mxu0 %v2494_v0  ;;  %2253 = vmatprep.subr.mxu1 %v2494_v0 }
 0xad9   :  { %2255 = vmatprep.mubr.msk.f32.mxu1 %vm2495_vm2, %v2494_v0  ;;  %2254 = vmatpush3.msra.mxu1 %v2580_v7 }
 0xada   :  { %2239 = vmatpush3.msra.mxu0 %v2670_v37  ;;  %2258 = vmatprep.subr.mxu1 %v2494_v0 }
 0xadb   :  { %2240 = vmatprep.subr.mxu0 %v2494_v0 }
 0xadc   :  { %2241 = vmatpush3.msra.mxu0 %v2678_v38 }
 0xadd   :  { %2242 = vmatprep.subr.mxu0 %v2494_v0 }
 0xade   :  { %2243 = vmatpush3.msra.mxu0 %v2687_v39 }
 0xadf   :  { %2277 = vmatprep.subr.mxu0 %v2494_v0 }
 0xb8e   :  { %v1077_v13 = vpop.f32.mrf.mxu0 }
 0xb8f   :  { %v1081_v14 = vadd.f32 %v1077_v13, %v161_v12 }
 0xb90   :  { %v2227_v15 = vpop.f32.mrf.mxu0 }
 0xb91   :  { %2408 = vtanh.f32 %v1081_v14  ;;  %v1940_v21 = vmul.f32 -1.442695, %v1081_v14 }
 0xb92   :  { %v981_v16 = vpop.f32.mrf.mxu1 }
 0xb93   :  { %v982_v17 = vadd.f32 %v2742_v51, %v981_v16 }
 0xb94   :  { %v2216_v18 = vpop.f32.mrf.mxu1 }
 0xb95   :  { %2410 = vtanh.f32 %v982_v17  ;;  %v1938_v22 = vmul.f32 -1.442695, %v982_v17 }
 0xb96   :  { %2412 = vpow2.f32 %v1940_v21 }
 0xb97   :  { %2414 = vpow2.f32 %v1938_v22 }
 0xb9e   :  { %v2409_v19 = vpop.eup %2408 }
 0xb9f   :  { %1091 = vrot.lane.b32.xlu1 %v2409_v19, %s2496_s20 }
 0xba2   :  { %v2411_v20 = vpop.eup %2410 }
 0xba3   :  { %994 = vrot.lane.b32.xlu0 %v2411_v20, %s2496_s20  ;;  %v2413_v47 = vpop.eup %2412 }
 0xba4   :  { %v1085_v23 = vadd.f32 1.0, %v2413_v47  ;;  %v2415_v24 = vpop.eup %2414 }
 0xba5   :  { %v988_v25 = vadd.f32 1.0, %v2415_v24 }
 0xba6   :  { %2416 = vrcp.f32 %v1085_v23 }
 0xba7   :  { %2418 = vrcp.f32 %v988_v25 }
 0xbb3   :  { %v2417_v26 = vpop.eup %2416 }
 0xbb4   :  { %v2419_v33 = vpop.eup %2418  ;;  %v1089_v44 = vmul.f32 %v2417_v26, %v2849_v57 }
 0xbb5   :  { %v992_v42 = vmul.f32 %v2419_v33, %v2853_v60 }
 0xc11   :  { %v1092_v29 = vpop.permute.xlu1 %1091 }
 0xc12   :  { %v1094_v31 = vmul.f32 %v2417_v26, %v1092_v29 }
 0xc14   :  { %1096 = vrot.lane.b32.xlu1 %v1094_v31, %s2497_s21 }
 0xc15   :  { %v995_v35 = vpop.permute.xlu0 %994 }
 0xc16   :  { %v997_v36 = vmul.f32 %v2419_v33, %v995_v35 }
 0xc18   :  { %999 = vrot.lane.b32.xlu0 %v997_v36, %s2497_s21 }
 0xc86   :  { %v1097_v40 = vpop.permute.xlu1 %1096 }
 0xc87   :  { %v2899_v41 = vadd.f32 %v1097_v40, %v1089_v44 }
 0xc89   :  { %2420 = vtanh.f32 %v2899_v41 }
 0xc8a   :  { %v1000_v43 = vpop.permute.xlu0 %999 }
 0xc8b   :  { %v2903_v49 = vadd.f32 %v1000_v43, %v992_v42 }
 0xc8d   :  { %2422 = vtanh.f32 %v2903_v49 }
 0xc96   :  { %v2421_v52 = vpop.eup %2420 }
 0xc97   :  { %1102 = vrot.lane.b32.xlu1 %v2421_v52, %s2496_s20 }
 0xc9a   :  { %v2423_v53 = vpop.eup %2422 }
 0xc9b   :  { %1005 = vrot.lane.b32.xlu0 %v2423_v53, %s2496_s20 }
 0xd09   :  { %v1103_v54 = vpop.permute.xlu1 %1102 }
 0xd0a   :  { %v1105_v45 = vmul.f32 %v2417_v26, %v1103_v54 }
 0xd0c   :  { %1107 = vrot.lane.b32.xlu0 %v1105_v45, %s2497_s21 }
 0xd0d   :  { %v1006_v55 = vpop.permute.xlu0 %1005 }
 0xd0e   :  { %v1008_v56 = vmul.f32 %v2419_v33, %v1006_v55 }
 0xd10   :  { %1111 = vrot.lane.b32.xlu1 %v1008_v56, %s2496_s20 }
 0xd7e   :  { %v1108_v57 = vpop.permute.xlu0 %1107 }
 0xd7f   :  { %2256 = vmatmul.mubr.msk.f32.vlgmr.msra.gmra.mxu1 %vm192_vm3, %v1108_v57 }
 0xd80   :  { %2259 = vmatpush3.msra.mxu1 %v2619_v27  ;;  %2274 = vmatprep.mubr.msk.f32.mxu1 %vm2495_vm2, %v2494_v0 }
 0xd81   :  { %2260 = vmatprep.subr.mxu1 %v2494_v0 }
 0xd82   :  { %2261 = vmatpush3.msra.mxu1 %v2625_v28  ;;  %v1112_v58 = vpop.permute.xlu1 %1111 }
 0xd83   :  { %2262 = vmatprep.subr.mxu1 %v2494_v0  ;;  %v1114_v59 = vsel %vm192_vm3, %v1108_v57, %v1112_v58 }
 0xd84   :  { %2263 = vmatpush3.msra.mxu1 %v2636_v30  ;;  %2245 = vmatmul.mubr.msk.f32.vlgmr.msra.gmra.mxu0 %vm302_vm4, %v1114_v59 }
 0xd85   :  { %2264 = vmatprep.subr.mxu1 %v2494_v0  ;;  %2278 = vmatpush3.msra.mxu0 %v2550_v2  ;;  %v166_v2 = vadd.f32 %v2729_v46, %v2602_v9 }
 0xd86   :  { %2265 = vmatpush3.msra.mxu1 %v2647_v32  ;;  %2279 = vmatprep.subr.mxu0 %v2494_v0 }
 0xd87   :  { %2266 = vmatprep.subr.mxu1 %v2494_v0  ;;  %2280 = vmatpush3.msra.mxu0 %v2564_v5 }
 0xd88   :  { %2267 = vmatpush3.msra.mxu1 %v2658_v34  ;;  %2281 = vmatprep.subr.mxu0 %v2494_v0 }
 0xd89   :  { %2285 = vmatprep.mubr.msk.f32.mxu0 %vm2495_vm2, %v2494_v0  ;;  %2282 = vmatpush3.msra.mxu0 %v2572_v6 }
 0xd8a   :  { %2268 = vmatprep.subr.mxu1 %v2494_v0  ;;  %2283 = vmatprep.subr.mxu0 %v2494_v0 }
 0xd8b   :  { %2269 = vmatpush3.msra.mxu1 %v2670_v37  ;;  %2284 = vmatpush3.msra.mxu0 %v2580_v7 }
 0xd8c   :  { %2270 = vmatprep.subr.mxu1 %v2494_v0  ;;  %2288 = vmatprep.subr.mxu0 %v2494_v0 }
 0xd8d   :  { %2271 = vmatpush3.msra.mxu1 %v2678_v38 }
 0xd8e   :  { %2272 = vmatprep.subr.mxu1 %v2494_v0 }
 0xd8f   :  { %2273 = vmatpush3.msra.mxu1 %v2687_v39 }
 0xd90   :  { %2307 = vmatprep.subr.mxu1 %v2494_v0 }
 0xe3f   :  { %v1280_v5 = vpop.f32.mrf.mxu1 }
 0xe40   :  { %v1284_v6 = vadd.f32 %v1280_v5, %v166_v2 }
 0xe41   :  { %v2257_v60 = vpop.f32.mrf.mxu1 }
 0xe42   :  { %2424 = vtanh.f32 %v1284_v6  ;;  %v1944_v3 = vmul.f32 -1.442695, %v1284_v6 }
 0xe44   :  { %v1184_v7 = vpop.f32.mrf.mxu0 }
 0xe45   :  { %v1185_v61 = vadd.f32 %v2742_v51, %v1184_v7 }
 0xe46   :  { %v2246_v62 = vpop.f32.mrf.mxu0 }
 0xe47   :  { %2426 = vtanh.f32 %v1185_v61  ;;  %v1942_v4 = vmul.f32 -1.442695, %v1185_v61 }
 0xe48   :  { %2428 = vpow2.f32 %v1944_v3 }
 0xe49   :  { %2430 = vpow2.f32 %v1942_v4 }
 0xe4f   :  { %v2425_v63 = vpop.eup %2424 }
 0xe50   :  { %1294 = vrot.lane.b32.xlu1 %v2425_v63, %s2496_s20 }
 0xe54   :  { %v2427_v1 = vpop.eup %2426 }
 0xe55   :  { %1197 = vrot.lane.b32.xlu0 %v2427_v1, %s2496_s20  ;;  %v2429_v46 = vpop.eup %2428 }
 0xe56   :  { %v1288_v8 = vadd.f32 1.0, %v2429_v46  ;;  %v2431_v10 = vpop.eup %2430 }
 0xe57   :  { %v1191_v11 = vadd.f32 1.0, %v2431_v10  ;;  %v2484_v10 = vld [vmem:[%s3106_s4 + $0x38] sm:$0xff] }
 0xe58   :  { %2432 = vrcp.f32 %v1288_v8 }
 0xe59   :  { %2434 = vrcp.f32 %v1191_v11  ;;  %v2485_v11 = vld [vmem:[%s3106_s4 + $0x30] sm:$0xff] }
 0xe65   :  { %v2433_v12 = vpop.eup %2432 }
 0xe66   :  { %v2435_v15 = vpop.eup %2434  ;;  %v1292_v18 = vmul.f32 %v2433_v12, %v2899_v41 }
 0xe67   :  { %v1195_v21 = vmul.f32 %v2435_v15, %v2903_v49 }
 0xec2   :  { %v1295_v13 = vpop.permute.xlu1 %1294 }
 0xec3   :  { %v1297_v14 = vmul.f32 %v2433_v12, %v1295_v13 }
 0xec5   :  { %1299 = vrot.lane.b32.xlu1 %v1297_v14, %s2497_s21 }
 0xec7   :  { %v1198_v16 = vpop.permute.xlu0 %1197 }
 0xec8   :  { %v1200_v17 = vmul.f32 %v2435_v15, %v1198_v16  ;;  %v2488_v16 = vld [vmem:[%s3106_s4 + $0x18] sm:$0xff] }
 0xeca   :  { %1202 = vrot.lane.b32.xlu0 %v1200_v17, %s2497_s21  ;;  %v2489_v17 = vld [vmem:[%s3106_s4 + $0x10] sm:$0xff] }
 0xf37   :  { %v1300_v19 = vpop.permute.xlu1 %1299 }
 0xf38   :  { %v2949_v20 = vadd.f32 %v1300_v19, %v1292_v18  ;;  %v2490_v18 = vld [vmem:[%s3106_s4 + $0x8] sm:$0xff]  ;;  %v2491_v19 = vld [vmem:[%s3106_s4] sm:$0xff] }
 0xf3a   :  { %2436 = vtanh.f32 %v2949_v20 }
 0xf3c   :  { %v1203_v22 = vpop.permute.xlu0 %1202 }
 0xf3d   :  { %v2953_v47 = vadd.f32 %v1203_v22, %v1195_v21 }
 0xf3f   :  { %2438 = vtanh.f32 %v2953_v47 }
 0xf47   :  { %v2437_v23 = vpop.eup %2436 }
 0xf48   :  { %1305 = vrot.lane.b32.xlu1 %v2437_v23, %s2496_s20 }
 0xf4c   :  { %v2439_v24 = vpop.eup %2438 }
 0xf4d   :  { %1208 = vrot.lane.b32.xlu0 %v2439_v24, %s2496_s20 }
 0xfba   :  { %v1306_v25 = vpop.permute.xlu1 %1305 }
 0xfbb   :  { %v1308_v26 = vmul.f32 %v2433_v12, %v1306_v25  ;;  %v2486_v12 = vld [vmem:[%s3106_s4 + $0x28] sm:$0xff] }
 0xfbd   :  { %1310 = vrot.lane.b32.xlu0 %v1308_v26, %s2497_s21 }
 0xfbf   :  { %v1209_v29 = vpop.permute.xlu0 %1208 }
 0xfc0   :  { %v1211_v31 = vmul.f32 %v2435_v15, %v1209_v29  ;;  %v2487_v15 = vld [vmem:[%s3106_s4 + $0x20] sm:$0xff] }
 0xfc2   :  { %1314 = vrot.lane.b32.xlu1 %v1211_v31, %s2496_s20 }
0x102f   :  { %v1311_v33 = vpop.permute.xlu0 %1310 }
0x1030   :  { %2286 = vmatmul.mubr.msk.f32.vlgmr.msra.gmra.mxu0 %vm192_vm3, %v1311_v33 }
0x1031   :  { %2289 = vmatpush3.msra.mxu0 %v2619_v27  ;;  %2304 = vmatprep.mubr.msk.f32.mxu0 %vm2495_vm2, %v2494_v0  ;;  %v2480_v27 = vld [vmem:[%s3103_s2 + $0x18] sm:$0xff] }
0x1032   :  { %2290 = vmatprep.subr.mxu0 %v2494_v0 }
0x1033   :  { %2291 = vmatpush3.msra.mxu0 %v2625_v28  ;;  %v2481_v28 = vld [vmem:[%s3103_s2 + $0x10] sm:$0xff] }
0x1034   :  { %2292 = vmatprep.subr.mxu0 %v2494_v0  ;;  %v1315_v35 = vpop.permute.xlu1 %1314 }
0x1035   :  { %2293 = vmatpush3.msra.mxu0 %v2636_v30  ;;  %v1317_v36 = vsel %vm192_vm3, %v1311_v33, %v1315_v35  ;;  %v2482_v30 = vld [vmem:[%s3103_s2 + $0x8] sm:$0xff] }
0x1036   :  { %2294 = vmatprep.subr.mxu0 %v2494_v0  ;;  %2275 = vmatmul.mubr.msk.f32.vlgmr.msra.gmra.mxu1 %vm302_vm4, %v1317_v36 }
0x1037   :  { %2295 = vmatpush3.msra.mxu0 %v2647_v32  ;;  %2308 = vmatpush3.msra.mxu1 %v2480_v27  ;;  %v2483_v32 = vld [vmem:[%s3103_s2] sm:$0xff] }
0x1038   :  { %2296 = vmatprep.subr.mxu0 %v2494_v0  ;;  %2309 = vmatprep.subr.mxu1 %v2494_v0 }
0x1039   :  { %2315 = vmatprep.mubr.msk.f32.mxu1 %vm2495_vm2, %v2494_v0  ;;  %2310 = vmatpush3.msra.mxu1 %v2481_v28 }
0x103a   :  { %2297 = vmatpush3.msra.mxu0 %v2658_v34  ;;  %2311 = vmatprep.subr.mxu1 %v2494_v0  ;;  %v171_v34 = vadd.f32 %v2602_v9, %v2737_v50 }
0x103b   :  { %2298 = vmatprep.subr.mxu0 %v2494_v0  ;;  %2312 = vmatpush3.msra.mxu1 %v2482_v30 }
0x103c   :  { %2299 = vmatpush3.msra.mxu0 %v2670_v37  ;;  %2313 = vmatprep.subr.mxu1 %v2494_v0 }
0x103d   :  { %2300 = vmatprep.subr.mxu0 %v2494_v0  ;;  %2314 = vmatpush3.msra.mxu1 %v2483_v32 }
0x103e   :  { %2301 = vmatpush3.msra.mxu0 %v2678_v38  ;;  %2318 = vmatprep.subr.mxu1 %v2494_v0 }
0x103f   :  { %2302 = vmatprep.subr.mxu0 %v2494_v0 }
0x1040   :  { %2303 = vmatpush3.msra.mxu0 %v2687_v39 }
0x1041   :  { %2337 = vmatprep.subr.mxu0 %v2494_v0 }
0x10f0   :  { %v1483_v37 = vpop.f32.mrf.mxu0 }
0x10f1   :  { %v1487_v44 = vadd.f32 %v1483_v37, %v171_v34 }
0x10f2   :  { %v2287_v40 = vpop.f32.mrf.mxu0 }
0x10f3   :  { %2440 = vtanh.f32 %v1487_v44  ;;  %v1948_v39 = vmul.f32 -1.442695, %v1487_v44 }
0x10f6   :  { %v1387_v41 = vpop.f32.mrf.mxu1 }
0x10f7   :  { %v1388_v42 = vadd.f32 %v2742_v51, %v1387_v41 }
0x10f8   :  { %v2276_v43 = vpop.f32.mrf.mxu1 }
0x10f9   :  { %2442 = vtanh.f32 %v1388_v42  ;;  %v1946_v52 = vmul.f32 -1.442695, %v1388_v42 }
0x10fa   :  { %2444 = vpow2.f32 %v1948_v39 }
0x10fb   :  { %2446 = vpow2.f32 %v1946_v52 }
0x1100   :  { %v2441_v38 = vpop.eup %2440 }
0x1101   :  { %1497 = vrot.lane.b32.xlu1 %v2441_v38, %s2496_s20 }
0x1106   :  { %v2443_v49 = vpop.eup %2442 }
0x1107   :  { %1400 = vrot.lane.b32.xlu0 %v2443_v49, %s2496_s20  ;;  %v2445_v9 = vpop.eup %2444 }
0x1108   :  { %v1491_v50 = vadd.f32 1.0, %v2445_v9  ;;  %v2447_v53 = vpop.eup %2446 }
0x1109   :  { %v1394_v54 = vadd.f32 1.0, %v2447_v53 }
0x110a   :  { %2448 = vrcp.f32 %v1491_v50 }
0x110b   :  { %2450 = vrcp.f32 %v1394_v54 }
0x1117   :  { %v2449_v45 = vpop.eup %2448 }
0x1118   :  { %v2451_v57 = vpop.eup %2450  ;;  %v1495_v2 = vmul.f32 %v2449_v45, %v2949_v20  ;;  %v2492_v20 = vld [vmem:[%s3105_s3] ss:$0 sm:$0xff] }
0x1119   :  { %v1398_v60 = vmul.f32 %v2451_v57, %v2953_v47  ;;  %v176_v21 = vadd.f32 %v2492_v20, %v2733_v48 }
0x1173   :  { %v1498_v55 = vpop.permute.xlu1 %1497 }
0x1174   :  { %v1500_v56 = vmul.f32 %v2449_v45, %v1498_v55 }
0x1176   :  { %1502 = vrot.lane.b32.xlu1 %v1500_v56, %s2497_s21 }
0x1179   :  { %v1401_v58 = vpop.permute.xlu0 %1400 }
0x117a   :  { %v1403_v59 = vmul.f32 %v2451_v57, %v1401_v58  ;;  %v2493_v58 = vld [vmem:[%s3107_s5] ss:$0 sm:$0xff] }
0x117c   :  { %1405 = vrot.lane.b32.xlu0 %v1403_v59, %s2497_s21 }
0x11e8   :  { %v1503_v5 = vpop.permute.xlu1 %1502 }
0x11e9   :  { %v3007_v6 = vadd.f32 %v1503_v5, %v1495_v2 }
0x11eb   :  { %2452 = vtanh.f32 %v3007_v6 }
0x11ee   :  { %v1406_v7 = vpop.permute.xlu0 %1405 }
0x11ef   :  { %v3011_v61 = vadd.f32 %v1406_v7, %v1398_v60 }
0x11f1   :  { %2454 = vtanh.f32 %v3011_v61 }
0x11f8   :  { %v2453_v62 = vpop.eup %2452 }
0x11f9   :  { %1508 = vrot.lane.b32.xlu1 %v2453_v62, %s2496_s20 }
0x11fe   :  { %v2455_v63 = vpop.eup %2454 }
0x11ff   :  { %1411 = vrot.lane.b32.xlu0 %v2455_v63, %s2496_s20 }
0x126b   :  { %v1509_v1 = vpop.permute.xlu1 %1508 }
0x126c   :  { %v1511_v3 = vmul.f32 %v2449_v45, %v1509_v1 }
0x126e   :  { %1513 = vrot.lane.b32.xlu0 %v1511_v3, %s2497_s21 }
0x1271   :  { %v1412_v4 = vpop.permute.xlu0 %1411 }
0x1272   :  { %v1414_v46 = vmul.f32 %v2451_v57, %v1412_v4 }
0x1274   :  { %1517 = vrot.lane.b32.xlu1 %v1414_v46, %s2496_s20  ;;  %v1824_v46 = vld [vmem:[%s3108_s6 + $0x18] sm:$0xff] }
0x12e0   :  { %v1514_v8 = vpop.permute.xlu0 %1513 }
0x12e1   :  { %2316 = vmatmul.mubr.msk.f32.vlgmr.msra.gmra.mxu1 %vm192_vm3, %v1514_v8 }
0x12e2   :  { %2319 = vmatpush3.msra.mxu1 %v2484_v10  ;;  %2334 = vmatprep.mubr.msk.f32.mxu1 %vm2495_vm2, %v2494_v0  ;;  %v1822_v10 = vld [vmem:[%s3108_s6 + $0x8] sm:$0xff] }
0x12e3   :  { %2320 = vmatprep.subr.mxu1 %v2494_v0 }
0x12e4   :  { %2321 = vmatpush3.msra.mxu1 %v2485_v11  ;;  %v1821_v11 = vld [vmem:[%s3108_s6] sm:$0xff] }
0x12e5   :  { %2322 = vmatprep.subr.mxu1 %v2494_v0 }
0x12e6   :  { %2323 = vmatpush3.msra.mxu1 %v2486_v12  ;;  %v1518_v13 = vpop.permute.xlu1 %1517 }
0x12e7   :  { %2324 = vmatprep.subr.mxu1 %v2494_v0  ;;  %v1520_v14 = vsel %vm192_vm3, %v1514_v8, %v1518_v13  ;;  %v1823_v8 = vld [vmem:[%s3108_s6 + $0x10] sm:$0xff] }
0x12e8   :  { %2325 = vmatpush3.msra.mxu1 %v2487_v15  ;;  %2305 = vmatmul.mubr.msk.f32.vlgmr.msra.gmra.mxu0 %vm302_vm4, %v1520_v14 }
0x12e9   :  { %2326 = vmatprep.subr.mxu1 %v2494_v0  ;;  %2345 = vmatprep.mubr.msk.f32.mxu0 %vm2495_vm2, %v2494_v0 }
0x12ea   :  { %2327 = vmatpush3.msra.mxu1 %v2488_v16  ;;  %2338 = vmatpush3.msra.mxu0 %v1824_v46  ;;  %v1955_v16 = vld [vmem:[%s3109_s7] ss:$0 sm:$0xff] }
0x12eb   :  { %2328 = vmatprep.subr.mxu1 %v2494_v0  ;;  %2339 = vmatprep.subr.mxu0 %v2494_v0 }
0x12ec   :  { %2329 = vmatpush3.msra.mxu1 %v2489_v17  ;;  %2340 = vmatpush3.msra.mxu0 %v1823_v8 }
0x12ed   :  { %2330 = vmatprep.subr.mxu1 %v2494_v0  ;;  %2341 = vmatprep.subr.mxu0 %v2494_v0 }
0x12ee   :  { %2331 = vmatpush3.msra.mxu1 %v2490_v18  ;;  %2342 = vmatpush3.msra.mxu0 %v1822_v10 }
0x12ef   :  { %2332 = vmatprep.subr.mxu1 %v2494_v0  ;;  %2343 = vmatprep.subr.mxu0 %v2494_v0 }
0x12f0   :  { %2333 = vmatpush3.msra.mxu1 %v2491_v19  ;;  %2344 = vmatpush3.msra.mxu0 %v1821_v11 }
0x13a1   :  { %v1686_v22 = vpop.f32.mrf.mxu1 }
0x13a2   :  { %v1690_v47 = vadd.f32 %v1686_v22, %v176_v21 }
0x13a3   :  { %v2317_v23 = vpop.f32.mrf.mxu1 }
0x13a4   :  { %2456 = vtanh.f32 %v1690_v47  ;;  %v1952_v33 = vmul.f32 -1.442695, %v1690_v47 }
0x13a8   :  { %v1590_v24 = vpop.f32.mrf.mxu0 }
0x13a9   :  { %v1591_v25 = vadd.f32 %v2742_v51, %v1590_v24 }
0x13aa   :  { %v2306_v26 = vpop.f32.mrf.mxu0 }
0x13ab   :  { %2458 = vtanh.f32 %v1591_v25  ;;  %v1950_v35 = vmul.f32 -1.442695, %v1591_v25 }
0x13ac   :  { %2460 = vpow2.f32 %v1952_v33 }
0x13ad   :  { %2462 = vpow2.f32 %v1950_v35 }
0x13b1   :  { %v2457_v29 = vpop.eup %2456 }
0x13b2   :  { %1700 = vrot.lane.b32.xlu1 %v2457_v29, %s2496_s20 }
0x13b8   :  { %v2459_v31 = vpop.eup %2458 }
0x13b9   :  { %1603 = vrot.lane.b32.xlu0 %v2459_v31, %s2496_s20  ;;  %v2461_v48 = vpop.eup %2460 }
0x13ba   :  { %v1694_v36 = vadd.f32 1.0, %v2461_v48  ;;  %v2463_v27 = vpop.eup %2462 }
0x13bb   :  { %v1597_v28 = vadd.f32 1.0, %v2463_v27 }
0x13bc   :  { %2464 = vrcp.f32 %v1694_v36 }
0x13bd   :  { %2466 = vrcp.f32 %v1597_v28 }
0x13c9   :  { %v2465_v30 = vpop.eup %2464 }
0x13ca   :  { %v2467_v34 = vpop.eup %2466  ;;  %v1698_v40 = vmul.f32 %v2465_v30, %v3007_v6 }
0x13cb   :  { %v1601_v43 = vmul.f32 %v2467_v34, %v3011_v61 }
0x1424   :  { %v1701_v51 = vpop.permute.xlu1 %1700 }
0x1425   :  { %v1703_v32 = vmul.f32 %v2465_v30, %v1701_v51 }
0x1427   :  { %1705 = vrot.lane.b32.xlu1 %v1703_v32, %s2497_s21 }
0x142b   :  { %v1604_v37 = vpop.permute.xlu0 %1603 }
0x142c   :  { %v1606_v44 = vmul.f32 %v2467_v34, %v1604_v37 }
0x142e   :  { %1608 = vrot.lane.b32.xlu0 %v1606_v44, %s2497_s21 }
0x1499   :  { %v1706_v41 = vpop.permute.xlu1 %1705 }
0x149a   :  { %v1708_v42 = vadd.f32 %v1706_v41, %v1698_v40 }
0x149c   :  { %2468 = vtanh.f32 %v1708_v42 }
0x14a0   :  { %v1609_v38 = vpop.permute.xlu0 %1608 }
0x14a1   :  { %v1611_v49 = vadd.f32 %v1609_v38, %v1601_v43 }
0x14a3   :  { %2470 = vtanh.f32 %v1611_v49 }
0x14a9   :  { %v2469_v39 = vpop.eup %2468 }
0x14aa   :  { %1711 = vrot.lane.b32.xlu1 %v2469_v39, %s2496_s20 }
0x14b0   :  { %v2471_v52 = vpop.eup %2470 }
0x14b1   :  { %1614 = vrot.lane.b32.xlu0 %v2471_v52, %s2496_s20 }
0x151c   :  { %v1712_v9 = vpop.permute.xlu1 %1711 }
0x151d   :  { %v1714_v50 = vmul.f32 %v2465_v30, %v1712_v9 }
0x151f   :  { %1716 = vrot.lane.b32.xlu0 %v1714_v50, %s2497_s21 }
0x1523   :  { %v1615_v53 = vpop.permute.xlu0 %1614 }
0x1524   :  { %v1617_v54 = vmul.f32 %v2467_v34, %v1615_v53 }
0x1526   :  { %1720 = vrot.lane.b32.xlu1 %v1617_v54, %s2496_s20 }
0x1591   :  { %v1717_v45 = vpop.permute.xlu0 %1716 }
0x1598   :  { %v1721_v55 = vpop.permute.xlu1 %1720 }
0x1599   :  { %v1723_v56 = vsel %vm192_vm3, %v1717_v45, %v1721_v55 }
0x159a   :  { %2335 = vmatmul.mubr.msk.f32.vlgmr.msra.gmra.mxu1 %vm302_vm4, %v1723_v56 }
0x165a   :  { %v1793_v57 = vpop.f32.mrf.mxu1 }
0x165b   :  { %v1794_v59 = vadd.f32 %v2493_v58, %v1793_v57 }
0x165c   :  { %v2336_v2 = vpop.f32.mrf.mxu1 }
0x165d   :  { %2472 = vtanh.f32 %v1794_v59  ;;  %v1954_v6 = vmul.f32 -1.442695, %v1794_v59 }
0x165f   :  { %2474 = vpow2.f32 %v1954_v6 }
0x166a   :  { %v2473_v5 = vpop.eup %2472 }
0x166b   :  { %1806 = vrot.lane.b32.xlu0 %v2473_v5, %s2496_s20 }
0x166c   :  { %v2475_v60 = vpop.eup %2474 }
0x166d   :  { %v1800_v7 = vadd.f32 1.0, %v2475_v60 }
0x166f   :  { %2476 = vrcp.f32 %v1800_v7 }
0x167c   :  { %v2477_v61 = vpop.eup %2476 }
0x167d   :  { %v1804_v1 = vmul.f32 %v2477_v61, %v1611_v49 }
0x16dd   :  { %v1807_v62 = vpop.permute.xlu0 %1806 }
0x16de   :  { %v1809_v63 = vmul.f32 %v2477_v61, %v1807_v62 }
0x16e0   :  { %1811 = vrot.lane.b32.xlu1 %v1809_v63, %s2497_s21 }
0x1752   :  { %v1812_v3 = vpop.permute.xlu1 %1811 }
0x1753   :  { %v1814_v4 = vadd.f32 %v1812_v3, %v1804_v1 }
0x1755   :  { %2478 = vtanh.f32 %v1814_v4 }
0x1762   :  { %v2479_v12 = vpop.eup %2478 }
0x1763   :  { %1817 = vrot.lane.b32.xlu0 %v2479_v12, %s2496_s20 }
0x17d5   :  { %v1818_v13 = vpop.permute.xlu0 %1817 }
0x17d6   :  { %v1820_v14 = vmul.f32 %v2477_v61, %v1818_v13 }
0x17d8   :  { %1833 = vrot.lane.b32.xlu1 %v1820_v14, %s2497_s21 }
0x184a   :  { %v1834_v15 = vpop.permute.xlu1 %1833 }
0x184b   :  { %2346 = vmatmul.mubr.msk.f32.vlgmr.msra.gmra.mxu0 %vm192_vm3, %v1834_v15 }
0x190b   :  { %v1903_v17 = vpop.f32.mrf.mxu0 }
0x190c   :  { %v1904_v18 = vadd.f32 %v1955_v16, %v1903_v17 }
0x190d   :  { %v2347_v19 = vpop.f32.mrf.mxu0 }
0x190e   :  { %1908 = vst.msk [vmem:[%s3110_s8] sm:$0xff] %vm1907_vm5, %v1904_v18 }

</bundles_post_ra>
